<compile_context>
chip_gen: v7x
topology: tpu7x:2x2x1
jax: 0.10.0
libtpu: 0.0.40
codegen_flags: <defaults>
</compile_context>

<pallas_src>
import functools

import jax
import jax.numpy as jnp
from jax import lax
from jax.experimental import pallas as pl
from jax.experimental.pallas import tpu as pltpu


# ----------------------------------------------------------------------------
# Pallas kernel 1: fused im2col + conv matmul + per-channel batch statistics.
#
# One grid step = one image. The padded NHWC image lives in VMEM; each of the
# k*k shifted windows is sliced out in-register and contributes a
# (OH*OW, C_in) x (C_in, C_out) MXU matmul into an f32 accumulator.  The
# per-channel sum and sum-of-squares needed by training-mode BatchNorm are
# reduced in-kernel so the activation is never re-read from HBM for stats.
# ----------------------------------------------------------------------------
def _conv_bnstats_kernel(x_ref, w_ref, y_ref, sum_ref, sq_ref, *,
                         k, s, oh, ow, c_in, c_out):
    x = x_ref[...]                      # (Hp, Wp, C_in), already zero-padded
    w = w_ref[...]                      # (k, k, C_in, C_out)
    m = oh * ow

    acc = jnp.zeros((m, c_out), dtype=jnp.float32)
    for dy in range(k):                 # static unroll: k*k small matmuls
        for dx in range(k):
            win = lax.slice(
                x,
                (dy, dx, 0),
                (dy + (oh - 1) * s + 1, dx + (ow - 1) * s + 1, c_in),
                (s, s, 1),
            )                           # (OH, OW, C_in)
            a = win.reshape(m, c_in)    # leading-dim collapse (OW % 8 == 0)
            acc = acc + jnp.dot(a, w[dy, dx],
                                preferred_element_type=jnp.float32)

    y_ref[...] = acc.astype(y_ref.dtype)
    # Per-image partial statistics (finished with a tiny reduction in glue).
    sum_ref[...] = jnp.sum(acc, axis=0, keepdims=True)
    sq_ref[...] = jnp.sum(acc * acc, axis=0, keepdims=True)


def conv_bnstats(x_pad, w_khwc, *, k, s, oh, ow):
    n, hp, wp, c_in = x_pad.shape
    c_out = w_khwc.shape[-1]
    m_img = oh * ow
    kernel = functools.partial(_conv_bnstats_kernel, k=k, s=s, oh=oh, ow=ow,
                               c_in=c_in, c_out=c_out)
    flops = 2 * n * m_img * (k * k * c_in) * c_out
    bytes_accessed = 4 * (x_pad.size + w_khwc.size
                          + n * m_img * c_out + 2 * n * c_out)
    return pl.pallas_call(
        kernel,
        out_shape=(
            jax.ShapeDtypeStruct((n * m_img, c_out), jnp.float32),  # y (NHWC-flat)
            jax.ShapeDtypeStruct((n, 1, c_out), jnp.float32),       # sum_c  per image
            jax.ShapeDtypeStruct((n, 1, c_out), jnp.float32),       # sumsq_c per image
        ),
        grid_spec=pltpu.PrefetchScalarGridSpec(
            num_scalar_prefetch=0,
            grid=(n,),
            in_specs=[
                pl.BlockSpec((None, hp, wp, c_in), lambda i: (i, 0, 0, 0)),
                pl.BlockSpec((k, k, c_in, c_out), lambda i: (0, 0, 0, 0)),
            ],
            out_specs=[
                pl.BlockSpec((m_img, c_out), lambda i: (i, 0)),
                pl.BlockSpec((None, 1, c_out), lambda i: (i, 0, 0)),
                pl.BlockSpec((None, 1, c_out), lambda i: (i, 0, 0)),
            ],
        ),
        compiler_params=pltpu.CompilerParams(
            dimension_semantics=("parallel",),
        ),
        cost_estimate=pl.CostEstimate(
            flops=flops, transcendentals=0, bytes_accessed=bytes_accessed),
    )(x_pad, w_khwc)


# ----------------------------------------------------------------------------
# Pallas kernel 2: fused BatchNorm affine + Mish, lane-dense.
#   z    = y * scale + shift      (scale/shift fold mean/var/gamma/beta)
#   mish = z * tanh(softplus(z))
# The wrapper feeds a (rows, 128) packed view of y with scale/shift tiled to
# 128 lanes, so stores and the exp/log1p/tanh EUP ops run at full occupancy.
# ----------------------------------------------------------------------------
def _bn_mish_kernel(y_ref, scale_ref, shift_ref, o_ref):
    z = y_ref[...] * scale_ref[...] + shift_ref[...]
    # numerically stable softplus: max(z,0) + log1p(exp(-|z|))
    sp = jnp.maximum(z, 0.0) + jnp.log1p(jnp.exp(-jnp.abs(z)))
    o_ref[...] = (z * jnp.tanh(sp)).astype(o_ref.dtype)


def bn_mish(y2d, scale_row, shift_row, *, block_rows):
    r, l = y2d.shape
    assert r % block_rows == 0
    return pl.pallas_call(
        _bn_mish_kernel,
        out_shape=jax.ShapeDtypeStruct((r, l), jnp.float32),
        grid_spec=pltpu.PrefetchScalarGridSpec(
            num_scalar_prefetch=0,
            grid=(r // block_rows,),
            in_specs=[
                pl.BlockSpec((block_rows, l), lambda i: (i, 0)),
                pl.BlockSpec((1, l), lambda i: (0, 0)),
                pl.BlockSpec((1, l), lambda i: (0, 0)),
            ],
            out_specs=pl.BlockSpec((block_rows, l), lambda i: (i, 0)),
        ),
        compiler_params=pltpu.CompilerParams(
            dimension_semantics=("parallel",),
        ),
        cost_estimate=pl.CostEstimate(
            flops=8 * r * l, transcendentals=3 * r * l,
            bytes_accessed=4 * (2 * r * l + 2 * l)),
    )(y2d, scale_row, shift_row)


# ----------------------------------------------------------------------------
# Full Conv module forward (Conv2d -> BatchNorm2d(training) -> Mish).
# ----------------------------------------------------------------------------
@functools.partial(jax.jit, static_argnames=("k", "s", "p"))
def conv_module_forward(x, conv_w, conv_b, bn_gamma, bn_beta, *, k, s, p,
                        eps=1e-5):
    n, c_in, h, w = x.shape
    c_out = conv_w.shape[0]
    oh = (h + 2 * p - k) // s + 1
    ow = (w + 2 * p - k) // s + 1
    m = n * oh * ow

    # NCHW -> padded NHWC (one cheap layout pass; the k*k patch matrix itself
    # is never materialized -- the im2col happens inside the Pallas kernel).
    x_nhwc = jnp.transpose(x.astype(jnp.float32), (0, 2, 3, 1))
    x_pad = jnp.pad(x_nhwc, ((0, 0), (p, p), (p, p), (0, 0)))

    # PyTorch weight (C_out, C_in, kh, kw) -> (kh, kw, C_in, C_out).
    w_khwc = jnp.transpose(conv_w.astype(jnp.float32), (2, 3, 1, 0))

    # conv_b is intentionally unused: a constant per-channel bias is exactly
    # cancelled by the training-mode BatchNorm mean subtraction.
    del conv_b

    y, psum, psq = conv_bnstats(x_pad, w_khwc, k=k, s=s, oh=oh, ow=ow)

    # Finish the BatchNorm statistics from the in-kernel partials
    # (single-pass E[y], E[y^2]; no extra HBM pass over y).
    tot = jnp.sum(psum, axis=(0, 1))                    # (C_out,)
    tot_sq = jnp.sum(psq, axis=(0, 1))                  # (C_out,)
    mean = tot / m
    var = jnp.maximum(tot_sq / m - mean * mean, 0.0)    # biased variance
    scale = bn_gamma.astype(jnp.float32) / jnp.sqrt(var + eps)
    shift = bn_beta.astype(jnp.float32) - mean * scale

    # Lane-dense fused BN + Mish: y is (M, C_out) row-major, so the
    # (M*C_out // 128, 128) view is a free reshape; scale/shift tile to 128
    # lanes with period C_out.
    per_img = (oh * ow * c_out) // 128
    if ((m * c_out) % 128 == 0 and 128 % c_out == 0
            and (oh * ow * c_out) % 128 == 0 and per_img > 0 and per_img % 8 == 0):
        rows = (m * c_out) // 128
        y_packed = y.reshape(rows, 128)
        scale_row = jnp.tile(scale, 128 // c_out).reshape(1, 128)
        shift_row = jnp.tile(shift, 128 // c_out).reshape(1, 128)
        # one image per grid step keeps the grid "parallel" for v7x's 2 TCs
        out_flat = bn_mish(y_packed, scale_row, shift_row, block_rows=per_img)
    else:
        # Fallback for shapes that don't pack into 128 lanes: single full block.
        out_flat = bn_mish(y, scale.reshape(1, c_out), shift.reshape(1, c_out),
                           block_rows=m)

    out_nhwc = out_flat.reshape(n, oh, ow, c_out)
    # TODO(synk): fold this NHWC->NCHW transpose into the bn_mish output
    # BlockSpec (write (C_out, tile) blocks straight into NCHW); kept as one
    # XLA transpose here for lowering robustness.
    return jnp.transpose(out_nhwc, (0, 3, 1, 2))


# ----------------------------------------------------------------------------
# Pure-JAX reference (for correctness check).
# ----------------------------------------------------------------------------
def conv_module_reference(x, conv_w, conv_b, bn_gamma, bn_beta, *, k, s, p,
                          eps=1e-5):
    y = lax.conv_general_dilated(
        x.astype(jnp.float32),
        conv_w.astype(jnp.float32),
        window_strides=(s, s),
        padding=((p, p), (p, p)),
        dimension_numbers=("NCHW", "OIHW", "NCHW"),
    ) + conv_b.reshape(1, -1, 1, 1)
    mean = jnp.mean(y, axis=(0, 2, 3), keepdims=True)
    var = jnp.mean((y - mean) ** 2, axis=(0, 2, 3), keepdims=True)
    z = (y - mean) / jnp.sqrt(var + eps)
    z = z * bn_gamma.reshape(1, -1, 1, 1) + bn_beta.reshape(1, -1, 1, 1)
    sp = jnp.maximum(z, 0.0) + jnp.log1p(jnp.exp(-jnp.abs(z)))
    return z * jnp.tanh(sp)


# ----------------------------------------------------------------------------
if __name__ == "__main__":
    # Module config: Conv(in_c=4, out_c=8, k=3, s=1, p=1), sam_enabled=False
    in_c, out_c, k, s, p = 4, 8, 3, 1, 1
    n, h, w = 2, 16, 16

    key = jax.random.PRNGKey(0)
    k1, k2, k3 = jax.random.split(key, 3)

    x = jax.random.normal(k1, (n, in_c, h, w), dtype=jnp.float32)
    conv_w = 0.1 * jax.random.normal(k2, (out_c, in_c, k, k), dtype=jnp.float32)
    conv_b = 0.1 * jax.random.normal(k3, (out_c,), dtype=jnp.float32)
    bn_gamma = jnp.ones((out_c,), dtype=jnp.float32)   # PyTorch BN init: weight=1
    bn_beta = jnp.zeros((out_c,), dtype=jnp.float32)   # PyTorch BN init: bias=0

    out = conv_module_forward(x, conv_w, conv_b, bn_gamma, bn_beta, k=k, s=s, p=p)
    out = jax.block_until_ready(out)

    ref = conv_module_reference(x, conv_w, conv_b, bn_gamma, bn_beta, k=k, s=s, p=p)
    ref = jax.block_until_ready(ref)

    assert out.shape == (n, out_c, h, w), out.shape
    max_err = float(jnp.max(jnp.abs(out - ref)))
    assert jnp.allclose(out, ref, rtol=5e-4, atol=1e-5), max_err
    print("KERNEL_OK")
</pallas_src>

<mosaic_0001>
module attributes {stable_mosaic.version = 11 : i64} {
  func.func @_conv_bnstats_kernel(%arg0: i32, %arg1: memref<1x18x18x4xf32, #tpu.memory_space<vmem>>, %arg2: memref<3x3x4x8xf32, #tpu.memory_space<vmem>>, %arg3: memref<256x8xf32, #tpu.memory_space<vmem>>, %arg4: memref<1x1x8xf32, #tpu.memory_space<vmem>>, %arg5: memref<1x1x8xf32, #tpu.memory_space<vmem>>) attributes {dimension_semantics = [#tpu.dimension_semantics<parallel>], iteration_bounds = array<i64: 2>, scalar_prefetch = 0 : i64, scratch_operands = 0 : i64, tpu.core_type = #tpu.core_type<tc>, window_params = [{transform_indices = @transform_0, window_bounds = array<i64: 1, 18, 18, 4>}, {pipeline_mode = #tpu.pipeline_mode<synchronous>, transform_indices = @transform_1, window_bounds = array<i64: 3, 3, 4, 8>}, {transform_indices = @transform_2, window_bounds = array<i64: 256, 8>}, {transform_indices = @transform_3, window_bounds = array<i64: 1, 1, 8>}, {transform_indices = @transform_4, window_bounds = array<i64: 1, 1, 8>}]} {
    %c0 = arith.constant 0 : index
    %c0_0 = arith.constant 0 : index
    %c0_1 = arith.constant 0 : index
    %c0_2 = arith.constant 0 : index
    %0 = vector.load %arg1[%c0, %c0_0, %c0_1, %c0_2] : memref<1x18x18x4xf32, #tpu.memory_space<vmem>>, vector<1x18x18x4xf32>
    %1 = vector.shape_cast %0 : vector<1x18x18x4xf32> to vector<18x18x4xf32>
    %c0_3 = arith.constant 0 : index
    %c0_4 = arith.constant 0 : index
    %c0_5 = arith.constant 0 : index
    %c0_6 = arith.constant 0 : index
    %2 = vector.load %arg2[%c0_3, %c0_4, %c0_5, %c0_6] : memref<3x3x4x8xf32, #tpu.memory_space<vmem>>, vector<3x3x4x8xf32>
    %cst = arith.constant 0.000000e+00 : f32
    %3 = vector.broadcast %cst : f32 to vector<256x8xf32>
    %4 = vector.extract_strided_slice %1 {offsets = [0, 0, 0], sizes = [16, 16, 4], strides = [1, 1, 1]} : vector<18x18x4xf32> to vector<16x16x4xf32>
    %5 = vector.shape_cast %4 : vector<16x16x4xf32> to vector<256x4xf32>
    %6 = vector.extract_strided_slice %2 {offsets = [0, 0, 0, 0], sizes = [1, 1, 4, 8], strides = [1, 1, 1, 1]} : vector<3x3x4x8xf32> to vector<1x1x4x8xf32>
    %7 = vector.shape_cast %6 : vector<1x1x4x8xf32> to vector<4x8xf32>
    %cst_7 = arith.constant dense<0.000000e+00> : vector<256x8xf32>
    %8 = tpu.matmul %5, %7, %cst_7 {dimension_numbers = #tpu.dot_dimension_numbers<[1], [0], [0], [1], [0, 0, 1, 1], [], []>} : vector<256x4xf32>, vector<4x8xf32>, vector<256x8xf32> -> vector<256x8xf32>
    %9 = arith.addf %3, %8 : vector<256x8xf32>
    %10 = vector.extract_strided_slice %1 {offsets = [0, 1, 0], sizes = [16, 16, 4], strides = [1, 1, 1]} : vector<18x18x4xf32> to vector<16x16x4xf32>
    %11 = vector.shape_cast %10 : vector<16x16x4xf32> to vector<256x4xf32>
    %12 = vector.extract_strided_slice %2 {offsets = [0, 1, 0, 0], sizes = [1, 1, 4, 8], strides = [1, 1, 1, 1]} : vector<3x3x4x8xf32> to vector<1x1x4x8xf32>
    %13 = vector.shape_cast %12 : vector<1x1x4x8xf32> to vector<4x8xf32>
    %cst_8 = arith.constant dense<0.000000e+00> : vector<256x8xf32>
    %14 = tpu.matmul %11, %13, %cst_8 {dimension_numbers = #tpu.dot_dimension_numbers<[1], [0], [0], [1], [0, 0, 1, 1], [], []>} : vector<256x4xf32>, vector<4x8xf32>, vector<256x8xf32> -> vector<256x8xf32>
    %15 = arith.addf %9, %14 : vector<256x8xf32>
    %16 = vector.extract_strided_slice %1 {offsets = [0, 2, 0], sizes = [16, 16, 4], strides = [1, 1, 1]} : vector<18x18x4xf32> to vector<16x16x4xf32>
    %17 = vector.shape_cast %16 : vector<16x16x4xf32> to vector<256x4xf32>
    %18 = vector.extract_strided_slice %2 {offsets = [0, 2, 0, 0], sizes = [1, 1, 4, 8], strides = [1, 1, 1, 1]} : vector<3x3x4x8xf32> to vector<1x1x4x8xf32>
    %19 = vector.shape_cast %18 : vector<1x1x4x8xf32> to vector<4x8xf32>
    %cst_9 = arith.constant dense<0.000000e+00> : vector<256x8xf32>
    %20 = tpu.matmul %17, %19, %cst_9 {dimension_numbers = #tpu.dot_dimension_numbers<[1], [0], [0], [1], [0, 0, 1, 1], [], []>} : vector<256x4xf32>, vector<4x8xf32>, vector<256x8xf32> -> vector<256x8xf32>
    %21 = arith.addf %15, %20 : vector<256x8xf32>
    %22 = vector.extract_strided_slice %1 {offsets = [1, 0, 0], sizes = [16, 16, 4], strides = [1, 1, 1]} : vector<18x18x4xf32> to vector<16x16x4xf32>
    %23 = vector.shape_cast %22 : vector<16x16x4xf32> to vector<256x4xf32>
    %24 = vector.extract_strided_slice %2 {offsets = [1, 0, 0, 0], sizes = [1, 1, 4, 8], strides = [1, 1, 1, 1]} : vector<3x3x4x8xf32> to vector<1x1x4x8xf32>
    %25 = vector.shape_cast %24 : vector<1x1x4x8xf32> to vector<4x8xf32>
    %cst_10 = arith.constant dense<0.000000e+00> : vector<256x8xf32>
    %26 = tpu.matmul %23, %25, %cst_10 {dimension_numbers = #tpu.dot_dimension_numbers<[1], [0], [0], [1], [0, 0, 1, 1], [], []>} : vector<256x4xf32>, vector<4x8xf32>, vector<256x8xf32> -> vector<256x8xf32>
    %27 = arith.addf %21, %26 : vector<256x8xf32>
    %28 = vector.extract_strided_slice %1 {offsets = [1, 1, 0], sizes = [16, 16, 4], strides = [1, 1, 1]} : vector<18x18x4xf32> to vector<16x16x4xf32>
    %29 = vector.shape_cast %28 : vector<16x16x4xf32> to vector<256x4xf32>
    %30 = vector.extract_strided_slice %2 {offsets = [1, 1, 0, 0], sizes = [1, 1, 4, 8], strides = [1, 1, 1, 1]} : vector<3x3x4x8xf32> to vector<1x1x4x8xf32>
    %31 = vector.shape_cast %30 : vector<1x1x4x8xf32> to vector<4x8xf32>
    %cst_11 = arith.constant dense<0.000000e+00> : vector<256x8xf32>
    %32 = tpu.matmul %29, %31, %cst_11 {dimension_numbers = #tpu.dot_dimension_numbers<[1], [0], [0], [1], [0, 0, 1, 1], [], []>} : vector<256x4xf32>, vector<4x8xf32>, vector<256x8xf32> -> vector<256x8xf32>
    %33 = arith.addf %27, %32 : vector<256x8xf32>
    %34 = vector.extract_strided_slice %1 {offsets = [1, 2, 0], sizes = [16, 16, 4], strides = [1, 1, 1]} : vector<18x18x4xf32> to vector<16x16x4xf32>
    %35 = vector.shape_cast %34 : vector<16x16x4xf32> to vector<256x4xf32>
    %36 = vector.extract_strided_slice %2 {offsets = [1, 2, 0, 0], sizes = [1, 1, 4, 8], strides = [1, 1, 1, 1]} : vector<3x3x4x8xf32> to vector<1x1x4x8xf32>
    %37 = vector.shape_cast %36 : vector<1x1x4x8xf32> to vector<4x8xf32>
    %cst_12 = arith.constant dense<0.000000e+00> : vector<256x8xf32>
    %38 = tpu.matmul %35, %37, %cst_12 {dimension_numbers = #tpu.dot_dimension_numbers<[1], [0], [0], [1], [0, 0, 1, 1], [], []>} : vector<256x4xf32>, vector<4x8xf32>, vector<256x8xf32> -> vector<256x8xf32>
    %39 = arith.addf %33, %38 : vector<256x8xf32>
    %40 = vector.extract_strided_slice %1 {offsets = [2, 0, 0], sizes = [16, 16, 4], strides = [1, 1, 1]} : vector<18x18x4xf32> to vector<16x16x4xf32>
    %41 = vector.shape_cast %40 : vector<16x16x4xf32> to vector<256x4xf32>
    %42 = vector.extract_strided_slice %2 {offsets = [2, 0, 0, 0], sizes = [1, 1, 4, 8], strides = [1, 1, 1, 1]} : vector<3x3x4x8xf32> to vector<1x1x4x8xf32>
    %43 = vector.shape_cast %42 : vector<1x1x4x8xf32> to vector<4x8xf32>
    %cst_13 = arith.constant dense<0.000000e+00> : vector<256x8xf32>
    %44 = tpu.matmul %41, %43, %cst_13 {dimension_numbers = #tpu.dot_dimension_numbers<[1], [0], [0], [1], [0, 0, 1, 1], [], []>} : vector<256x4xf32>, vector<4x8xf32>, vector<256x8xf32> -> vector<256x8xf32>
    %45 = arith.addf %39, %44 : vector<256x8xf32>
    %46 = vector.extract_strided_slice %1 {offsets = [2, 1, 0], sizes = [16, 16, 4], strides = [1, 1, 1]} : vector<18x18x4xf32> to vector<16x16x4xf32>
    %47 = vector.shape_cast %46 : vector<16x16x4xf32> to vector<256x4xf32>
    %48 = vector.extract_strided_slice %2 {offsets = [2, 1, 0, 0], sizes = [1, 1, 4, 8], strides = [1, 1, 1, 1]} : vector<3x3x4x8xf32> to vector<1x1x4x8xf32>
    %49 = vector.shape_cast %48 : vector<1x1x4x8xf32> to vector<4x8xf32>
    %cst_14 = arith.constant dense<0.000000e+00> : vector<256x8xf32>
    %50 = tpu.matmul %47, %49, %cst_14 {dimension_numbers = #tpu.dot_dimension_numbers<[1], [0], [0], [1], [0, 0, 1, 1], [], []>} : vector<256x4xf32>, vector<4x8xf32>, vector<256x8xf32> -> vector<256x8xf32>
    %51 = arith.addf %45, %50 : vector<256x8xf32>
    %52 = vector.extract_strided_slice %1 {offsets = [2, 2, 0], sizes = [16, 16, 4], strides = [1, 1, 1]} : vector<18x18x4xf32> to vector<16x16x4xf32>
    %53 = vector.shape_cast %52 : vector<16x16x4xf32> to vector<256x4xf32>
    %54 = vector.extract_strided_slice %2 {offsets = [2, 2, 0, 0], sizes = [1, 1, 4, 8], strides = [1, 1, 1, 1]} : vector<3x3x4x8xf32> to vector<1x1x4x8xf32>
    %55 = vector.shape_cast %54 : vector<1x1x4x8xf32> to vector<4x8xf32>
    %cst_15 = arith.constant dense<0.000000e+00> : vector<256x8xf32>
    %56 = tpu.matmul %53, %55, %cst_15 {dimension_numbers = #tpu.dot_dimension_numbers<[1], [0], [0], [1], [0, 0, 1, 1], [], []>} : vector<256x4xf32>, vector<4x8xf32>, vector<256x8xf32> -> vector<256x8xf32>
    %57 = arith.addf %51, %56 : vector<256x8xf32>
    %c0_16 = arith.constant 0 : index
    %c0_17 = arith.constant 0 : index
    %58 = vector.load %arg3[%c0_16, %c0_17] : memref<256x8xf32, #tpu.memory_space<vmem>>, vector<256x8xf32>
    tpu.vector_store %arg3[%c0_16, %c0_17], %57 {strides = array<i32>} : memref<256x8xf32, #tpu.memory_space<vmem>>, vector<256x8xf32>,
    %cst_18 = arith.constant dense<0.000000e+00> : vector<8xf32>
    %59 = vector.multi_reduction <add>, %57, %cst_18 [0] : vector<256x8xf32> to vector<8xf32>
    %60 = vector.shape_cast %59 : vector<8xf32> to vector<1x8xf32>
    %c0_19 = arith.constant 0 : index
    %c0_20 = arith.constant 0 : index
    %c0_21 = arith.constant 0 : index
    %61 = vector.load %arg4[%c0_19, %c0_20, %c0_21] : memref<1x1x8xf32, #tpu.memory_space<vmem>>, vector<1x1x8xf32>
    %62 = vector.shape_cast %61 : vector<1x1x8xf32> to vector<1x8xf32>
    %63 = vector.shape_cast %60 : vector<1x8xf32> to vector<1x1x8xf32>
    tpu.vector_store %arg4[%c0_19, %c0_20, %c0_21], %63 {strides = array<i32>} : memref<1x1x8xf32, #tpu.memory_space<vmem>>, vector<1x1x8xf32>,
    %64 = arith.mulf %57, %57 : vector<256x8xf32>
    %cst_22 = arith.constant dense<0.000000e+00> : vector<8xf32>
    %65 = vector.multi_reduction <add>, %64, %cst_22 [0] : vector<256x8xf32> to vector<8xf32>
    %66 = vector.shape_cast %65 : vector<8xf32> to vector<1x8xf32>
    %c0_23 = arith.constant 0 : index
    %c0_24 = arith.constant 0 : index
    %c0_25 = arith.constant 0 : index
    %67 = vector.load %arg5[%c0_23, %c0_24, %c0_25] : memref<1x1x8xf32, #tpu.memory_space<vmem>>, vector<1x1x8xf32>
    %68 = vector.shape_cast %67 : vector<1x1x8xf32> to vector<1x8xf32>
    %69 = vector.shape_cast %66 : vector<1x8xf32> to vector<1x1x8xf32>
    tpu.vector_store %arg5[%c0_23, %c0_24, %c0_25], %69 {strides = array<i32>} : memref<1x1x8xf32, #tpu.memory_space<vmem>>, vector<1x1x8xf32>,
    return
  }
  func.func @transform_0(%arg0: i32) -> (i32, i32, i32, i32) {
    %c0_i32 = arith.constant 0 : i32
    %c0_i32_0 = arith.constant 0 : i32
    %c0_i32_1 = arith.constant 0 : i32
    %c0_i32_2 = arith.constant 0 : i32
    return %arg0, %c0_i32, %c0_i32_0, %c0_i32_1 : i32, i32, i32, i32
  }
  func.func @transform_1(%arg0: i32) -> (i32, i32, i32, i32) {
    %c0_i32 = arith.constant 0 : i32
    %c0_i32_0 = arith.constant 0 : i32
    %c0_i32_1 = arith.constant 0 : i32
    %c0_i32_2 = arith.constant 0 : i32
    %c0_i32_3 = arith.constant 0 : i32
    return %c0_i32, %c0_i32_0, %c0_i32_1, %c0_i32_2 : i32, i32, i32, i32
  }
  func.func @transform_2(%arg0: i32) -> (i32, i32) {
    %c0_i32 = arith.constant 0 : i32
    %c0_i32_0 = arith.constant 0 : i32
    return %arg0, %c0_i32 : i32, i32
  }
  func.func @transform_3(%arg0: i32) -> (i32, i32, i32) {
    %c0_i32 = arith.constant 0 : i32
    %c0_i32_0 = arith.constant 0 : i32
    %c0_i32_1 = arith.constant 0 : i32
    return %arg0, %c0_i32, %c0_i32_0 : i32, i32, i32
  }
  func.func @transform_4(%arg0: i32) -> (i32, i32, i32) {
    %c0_i32 = arith.constant 0 : i32
    %c0_i32_0 = arith.constant 0 : i32
    %c0_i32_1 = arith.constant 0 : i32
    return %arg0, %c0_i32, %c0_i32_0 : i32, i32, i32
  }
}

module attributes {stable_mosaic.version = 11 : i64} {
  func.func @_bn_mish_kernel(%arg0: i32, %arg1: memref<16x128xf32, #tpu.memory_space<vmem>>, %arg2: memref<1x128xf32, #tpu.memory_space<vmem>>, %arg3: memref<1x128xf32, #tpu.memory_space<vmem>>, %arg4: memref<16x128xf32, #tpu.memory_space<vmem>>) attributes {dimension_semantics = [#tpu.dimension_semantics<parallel>], iteration_bounds = array<i64: 2>, scalar_prefetch = 0 : i64, scratch_operands = 0 : i64, tpu.core_type = #tpu.core_type<tc>, window_params = [{transform_indices = @transform_0, window_bounds = array<i64: 16, 128>}, {pipeline_mode = #tpu.pipeline_mode<synchronous>, transform_indices = @transform_1, window_bounds = array<i64: 1, 128>}, {pipeline_mode = #tpu.pipeline_mode<synchronous>, transform_indices = @transform_2, window_bounds = array<i64: 1, 128>}, {transform_indices = @transform_3, window_bounds = array<i64: 16, 128>}]} {
    %c0 = arith.constant 0 : index
    %c0_0 = arith.constant 0 : index
    %0 = vector.load %arg1[%c0, %c0_0] : memref<16x128xf32, #tpu.memory_space<vmem>>, vector<16x128xf32>
    %c0_1 = arith.constant 0 : index
    %c0_2 = arith.constant 0 : index
    %1 = vector.load %arg2[%c0_1, %c0_2] : memref<1x128xf32, #tpu.memory_space<vmem>>, vector<1x128xf32>
    %2 = vector.broadcast %1 : vector<1x128xf32> to vector<16x128xf32>
    %3 = arith.mulf %0, %2 : vector<16x128xf32>
    %c0_3 = arith.constant 0 : index
    %c0_4 = arith.constant 0 : index
    %4 = vector.load %arg3[%c0_3, %c0_4] : memref<1x128xf32, #tpu.memory_space<vmem>>, vector<1x128xf32>
    %5 = vector.broadcast %4 : vector<1x128xf32> to vector<16x128xf32>
    %6 = arith.addf %3, %5 : vector<16x128xf32>
    %cst = arith.constant 0.000000e+00 : f32
    %7 = vector.broadcast %cst : f32 to vector<16x128xf32>
    %8 = arith.maximumf %6, %7 : vector<16x128xf32>
    %9 = math.absf %6 : vector<16x128xf32>
    %cst_5 = arith.constant 0.000000e+00 : f32
    %10 = vector.broadcast %cst_5 : f32 to vector<16x128xf32>
    %11 = arith.subf %10, %9 : vector<16x128xf32>
    %12 = math.exp %11 : vector<16x128xf32>
    %13 = math.log1p %12 : vector<16x128xf32>
    %14 = arith.addf %8, %13 : vector<16x128xf32>
    %15 = math.tanh %14 : vector<16x128xf32>
    %16 = arith.mulf %6, %15 : vector<16x128xf32>
    %c0_6 = arith.constant 0 : index
    %c0_7 = arith.constant 0 : index
    %17 = vector.load %arg4[%c0_6, %c0_7] : memref<16x128xf32, #tpu.memory_space<vmem>>, vector<16x128xf32>
    tpu.vector_store %arg4[%c0_6, %c0_7], %16 {strides = array<i32>} : memref<16x128xf32, #tpu.memory_space<vmem>>, vector<16x128xf32>,
    return
  }
  func.func @transform_0(%arg0: i32) -> (i32, i32) {
    %c0_i32 = arith.constant 0 : i32
    %c0_i32_0 = arith.constant 0 : i32
    return %arg0, %c0_i32 : i32, i32
  }
  func.func @transform_1(%arg0: i32) -> (i32, i32) {
    %c0_i32 = arith.constant 0 : i32
    %c0_i32_0 = arith.constant 0 : i32
    %c0_i32_1 = arith.constant 0 : i32
    return %c0_i32, %c0_i32_0 : i32, i32
  }
  func.func @transform_2(%arg0: i32) -> (i32, i32) {
    %c0_i32 = arith.constant 0 : i32
    %c0_i32_0 = arith.constant 0 : i32
    %c0_i32_1 = arith.constant 0 : i32
    return %c0_i32, %c0_i32_0 : i32, i32
  }
  func.func @transform_3(%arg0: i32) -> (i32, i32) {
    %c0_i32 = arith.constant 0 : i32
    %c0_i32_0 = arith.constant 0 : i32
    return %arg0, %c0_i32 : i32, i32
  }
}

</mosaic_0001>

<bundles_post_ra>
// kernel: tile.18
= control target key start
LH: loop header
LB: loop body
LE: loop exit
PB: predicated region body
PF: predicated region fallthrough
CT: control target
= control target key end

     0   :  { %s28_s0 = inlined_call_operand.vmem [shape: f32[8], index: 0, kind: input, shape index: {}]   ;;  %s29_s1 = inlined_call_operand.vmem [shape: f32[16,8], index: 1, kind: output, shape index: {}]  }
   0x1   :  { %v4_v0 = vld [vmem:[%s28_s0] ss:$0 sm:$0xff] }
   0x2   :  { %5 = vst [vmem:[%s29_s1] sm:$0xff] %v4_v0  ;;  %8 = vst [vmem:[%s29_s1 + $0x8] sm:$0xff] %v4_v0 }

// kernel: tile.19
= control target key start
LH: loop header
LB: loop body
LE: loop exit
PB: predicated region body
PF: predicated region fallthrough
CT: control target
= control target key end

     0   :  { %s131_s10 = smov 120   ;;  %s132_s11 = smov 104   ;;  %vm3_vm0 = vcmask 64512   ;;  %vm9_vm1 = vcmask 1048512   ;;  %vm15_vm2 = vcmask 982912   ;;  %vm21_vm3 = vcmask 917312   ;;  %s207_s0 = inlined_call_operand.vmem [shape: f32[16,8], index: 0, kind: input, shape index: {}]   ;;  %s208_s1 = inlined_call_operand.vmem [shape: f32[1,128], index: 1, kind: output, shape index: {}]  }
   0x1   :  { %v101_v0 = vld [vmem:[%s207_s0 + $0xf] sm:$0x1]   ;;  %v103_v1 = vld [vmem:[%s207_s0 + $0xd] sm:$0x1]   ;;  %v102_v2 = vld [vmem:[%s207_s0 + $0xe] sm:$0x1]  }
   0x2   :  { %7 = vrot.lane.b32.xlu0 %v101_v0, %s131_s10  ;;  %19 = vrot.lane.b32.xlu1 %v103_v1, %s132_s11  ;;  %v104_v3 = vld [vmem:[%s207_s0 + $0xc] sm:$0x1]   ;;  %s133_s16 = smov 112   ;;  %s134_s17 = smov 96   ;;  %v105_v4 = vld [vmem:[%s207_s0 + $0xb] sm:$0x1]  }
   0x3   :  { %v106_v5 = vld [vmem:[%s207_s0 + $0xa] sm:$0x1]   ;;  %v2_v6 = vld [vmem:[%s207_s0] sm:$0x1]   ;;  %s135_s24 = smov 88   ;;  %s136_s25 = smov 80  }
   0x4   :  { %4 = vst.msk [vmem:[#allocation0] sm:$0x1] %vm3_vm0, %v2_v6   ;;  %v107_v7 = vld [vmem:[%s207_s0 + $0x9] sm:$0x1]   ;;  %v108_v8 = vld [vmem:[%s207_s0 + $0x8] sm:$0x1]  }
   0x5   :  { %s137_s30 = smov 72   ;;  %s138_s2 = smov 64   ;;  %v109_v9 = vld [vmem:[%s207_s0 + $0x7] sm:$0x1]   ;;  %v110_v10 = vld [vmem:[%s207_s0 + $0x6] sm:$0x1]  }
   0x6   :  { %13 = vrot.lane.b32.xlu0 %v102_v2, %s133_s16  ;;  %25 = vrot.lane.b32.xlu1 %v104_v3, %s134_s17  ;;  %s139_s7 = smov 56   ;;  %s140_s8 = smov 48   ;;  %v111_v11 = vld [vmem:[%s207_s0 + $0x5] sm:$0x1]   ;;  %v112_v12 = vld [vmem:[%s207_s0 + $0x4] sm:$0x1]  }
   0x7   :  { %s141_s13 = smov 40   ;;  %s142_s14 = smov 32   ;;  %v113_v13 = vld [vmem:[%s207_s0 + $0x3] sm:$0x1]   ;;  %v114_v14 = vld [vmem:[%s207_s0 + $0x2] sm:$0x1]  }
   0x8   :  { %s143_s19 = smov 24   ;;  %s144_s20 = smov 16   ;;  %v115_v15 = vld [vmem:[%s207_s0 + $0x1] sm:$0x1]   ;;  %vm27_vm4 = vcmask 851712   ;;  %vm33_vm5 = vcmask 786112  }
   0x9   :  { %s145_s0 = smov 8   ;;  %vm39_vm6 = vcmask 720512   ;;  %vm45_vm7 = vcmask 654912   ;;  %vm51_vm8 = vcmask 589312   ;;  %vm57_vm9 = vcmask 523712  }
   0xa   :  { %31 = vrot.lane.b32.xlu0 %v105_v4, %s135_s24  ;;  %37 = vrot.lane.b32.xlu1 %v106_v5, %s136_s25  ;;  %vm63_vm10 = vcmask 458112   ;;  %vm69_vm11 = vcmask 392512   ;;  %vm75_vm12 = vcmask 326912   ;;  %vm81_vm13 = vcmask 261312  }
   0xb   :  { %vm87_vm14 = vcmask 195712   ;;  %vm93_vm15 = vcmask 130112  }
   0xe   :  { %43 = vrot.lane.b32.xlu0 %v107_v7, %s137_s30  ;;  %49 = vrot.lane.b32.xlu1 %v108_v8, %s138_s2 }
  0x12   :  { %55 = vrot.lane.b32.xlu0 %v109_v9, %s139_s7  ;;  %61 = vrot.lane.b32.xlu1 %v110_v10, %s140_s8 }
  0x16   :  { %67 = vrot.lane.b32.xlu0 %v111_v11, %s141_s13  ;;  %73 = vrot.lane.b32.xlu1 %v112_v12, %s142_s14 }
  0x1a   :  { %79 = vrot.lane.b32.xlu0 %v113_v13, %s143_s19  ;;  %85 = vrot.lane.b32.xlu1 %v114_v14, %s144_s20 }
  0x1e   :  { %91 = vrot.lane.b32.xlu0 %v115_v15, %s145_s0 }
  0x74   :  { %v8_v16 = vpop.permute.xlu0 %7   ;;  %v20_v17 = vpop.permute.xlu1 %19  }
  0x75   :  { %10 = vst.msk [vmem:[#allocation0] sm:$0x1] %vm9_vm1, %v8_v16  }
  0x78   :  { %v14_v18 = vpop.permute.xlu0 %13   ;;  %v26_v19 = vpop.permute.xlu1 %25  }
  0x79   :  { %16 = vst.msk [vmem:[#allocation0] sm:$0x1] %vm15_vm2, %v14_v18  }
  0x7a   :  { %22 = vst.msk [vmem:[#allocation0] sm:$0x1] %vm21_vm3, %v20_v17  }
  0x7b   :  { %28 = vst.msk [vmem:[#allocation0] sm:$0x1] %vm27_vm4, %v26_v19  }
  0x7c   :  { %v32_v20 = vpop.permute.xlu0 %31   ;;  %v38_v21 = vpop.permute.xlu1 %37  }
  0x7d   :  { %34 = vst.msk [vmem:[#allocation0] sm:$0x1] %vm33_vm5, %v32_v20  }
  0x7e   :  { %40 = vst.msk [vmem:[#allocation0] sm:$0x1] %vm39_vm6, %v38_v21  }
  0x80   :  { %v44_v22 = vpop.permute.xlu0 %43   ;;  %v50_v23 = vpop.permute.xlu1 %49  }
  0x81   :  { %46 = vst.msk [vmem:[#allocation0] sm:$0x1] %vm45_vm7, %v44_v22  }
  0x82   :  { %52 = vst.msk [vmem:[#allocation0] sm:$0x1] %vm51_vm8, %v50_v23  }
  0x84   :  { %v56_v24 = vpop.permute.xlu0 %55   ;;  %v62_v25 = vpop.permute.xlu1 %61  }
  0x85   :  { %58 = vst.msk [vmem:[#allocation0] sm:$0x1] %vm57_vm9, %v56_v24  }
  0x86   :  { %64 = vst.msk [vmem:[#allocation0] sm:$0x1] %vm63_vm10, %v62_v25  }
  0x88   :  { %v68_v26 = vpop.permute.xlu0 %67   ;;  %v74_v27 = vpop.permute.xlu1 %73  }
  0x89   :  { %70 = vst.msk [vmem:[#allocation0] sm:$0x1] %vm69_vm11, %v68_v26  }
  0x8a   :  { %76 = vst.msk [vmem:[#allocation0] sm:$0x1] %vm75_vm12, %v74_v27  }
  0x8c   :  { %v80_v28 = vpop.permute.xlu0 %79   ;;  %v86_v29 = vpop.permute.xlu1 %85  }
  0x8d   :  { %82 = vst.msk [vmem:[#allocation0] sm:$0x1] %vm81_vm13, %v80_v28  }
  0x8e   :  { %88 = vst.msk [vmem:[#allocation0] sm:$0x1] %vm87_vm14, %v86_v29  }
  0x90   :  { %v92_v30 = vpop.permute.xlu0 %91  }
  0x91   :  { %94 = vst.msk [vmem:[#allocation0] sm:$0x1] %vm93_vm15, %v92_v30  }
  0x98   :  { %v98_v31 = vld [vmem:[#allocation0] sm:$0x1] }
  0x99   :  { %100 = vst [vmem:[%s208_s1] sm:$0x1] %v98_v31 }

// kernel: conv_module_forward.3
= control target key start
LH: loop header
LB: loop body
LE: loop exit
PB: predicated region body
PF: predicated region fallthrough
CT: control target
= control target key end

     0   :  { %s347_s12 = smov 0   ;;  %s377_s0 = inlined_call_operand.vmem [shape: f32[32,128], index: 0, kind: input, shape index: {}]   ;;  %s378_s1 = inlined_call_operand.vmem [shape: f32[1,128], index: 1, kind: input, shape index: {}]   ;;  %s379_s2 = inlined_call_operand.vmem [shape: f32[1,128], index: 2, kind: input, shape index: {}]   ;;  %s380_s3 = inlined_call_operand.vmem [shape: f32[32,128], index: 3, kind: output, shape index: {}]  }
   0x1 LB: > { %s286_s13 = sadd.s32 4294967295, %s325_s12   ;;  %p290_p0 = scmp.ge.s32.totalorder %s325_s12, 1  ;;  %s325_s12 = sphi %s347_s12, %s13_s12  }
   0x2   : > { %p138_p1 = scmp.lt.s32.totalorder %s325_s12, 3 }
   0x4   : > { %p139_p2 = pnand %p290_p0, %p138_p1 }
   0x5   : > { %s291_s14 = sshll.u32 (!%p139_p2), %s286_s13, 1  ;;  %v295_v0 = vld [vmem:[%s378_s1] ss:$0 sm:$0xff] (!%p139_p2) }
   0x6   : > { %142 = sbr.rel (%p139_p2) target bundleno = 71 (0x47), region = 32  ;;  %p163_p3 = scmp.lt.s32.totalorder (!%p139_p2), %s291_s14, 3  ;;  %v296_v3 = vld [vmem:[%s379_s2] ss:$0 sm:$0xff] (!%p139_p2) }
   0xd   : > { %s382_s14 = smov (!%p163_p3, %s291_s14), 3 }
   0xe   : > { %s292_s15 = sshll.u32 %s382_s14, 3 }
   0xf   : > { %s166_s20 = scalar_lea.vmem %s377_s0, %s292_s15  ;;  %s172_s25 = scalar_lea.vmem %s380_s3, %s292_s15 }
  0x10   : > { %v174_v1 = vld [vmem:[%s166_s20] sm:$0xff]  ;;  %v175_v2 = vld [vmem:[%s166_s20 + $0x8] sm:$0xff] }
  0x11   : > { %v183_v4 = vmul.f32 %v295_v0, %v174_v1  ;;  %v184_v5 = vmul.f32 %v295_v0, %v175_v2 }
  0x13   : > { %v192_v6 = vadd.f32 %v296_v3, %v183_v4  ;;  %v193_v7 = vadd.f32 %v296_v3, %v184_v5 }
  0x15   : > { %v196_v8 = vand.u32 2147483647, %v192_v6  ;;  %v197_v9 = vand.u32 2147483647, %v193_v7  ;;  %v194_v26 = vmax.f32 %v192_v6, 0.0  ;;  %v195_v29 = vmax.f32 %v193_v7, 0.0 }
  0x17   : > { %v198_v10 = vsub.f32 0.0, %v196_v8  ;;  %v199_v11 = vsub.f32 0.0, %v197_v9 }
  0x19   : > { %v200_v12 = vmul.f32 1.442695, %v198_v10  ;;  %v202_v13 = vmul.f32 1.442695, %v199_v11 }
  0x1b   : > { %307 = vpow2.f32 %v200_v12 }
  0x1c   : > { %309 = vpow2.f32 %v202_v13 }
  0x25   : > { %v308_v14 = vpop.eup %307 }
  0x26   : > { %v310_v15 = vpop.eup %309  ;;  %v204_v16 = vadd.f32 1.0, %v308_v14  ;;  %v207_v18 = vmul.f32 -0.5, %v308_v14  ;;  %v210_v21 = vand.u32 2147483647, %v308_v14 }
  0x27   : > { %v213_v17 = vadd.f32 1.0, %v310_v15  ;;  %v216_v19 = vmul.f32 -0.5, %v310_v15  ;;  %v219_v23 = vand.u32 2147483647, %v310_v15 }
  0x28   : > { %311 = vlog2.f32 %v204_v16  ;;  %v208_v20 = vadd.f32 1.0, %v207_v18  ;;  %vm211_vm0 = vcmp.lt.f32.partialorder %v210_v21, 0.0004427343 }
  0x29   : > { %313 = vlog2.f32 %v213_v17  ;;  %v217_v22 = vadd.f32 1.0, %v216_v19  ;;  %vm220_vm1 = vcmp.lt.f32.partialorder %v219_v23, 0.0004427343 }
  0x2a   : > { %v209_v24 = vmul.f32 %v308_v14, %v208_v20 }
  0x2b   : > { %v218_v27 = vmul.f32 %v310_v15, %v217_v22 }
  0x32   : > { %v312_v25 = vpop.eup %311 }
  0x33   : > { %v314_v28 = vpop.eup %313  ;;  %v206_v30 = vmul.f32 0.6931472, %v312_v25 }
  0x34   : > { %v215_v31 = vmul.f32 0.6931472, %v314_v28 }
  0x35   : > { %v212_v32 = vsel %vm211_vm0, %v209_v24, %v206_v30 }
  0x36   : > { %v221_v33 = vsel %vm220_vm1, %v218_v27, %v215_v31  ;;  %v222_v34 = vadd.f32 %v212_v32, %v194_v26 }
  0x37   : > { %v223_v35 = vadd.f32 %v221_v33, %v195_v29 }
  0x38   : > { %315 = vtanh.f32 %v222_v34 }
  0x39   : > { %317 = vtanh.f32 %v223_v35 }
  0x42   : > { %v316_v36 = vpop.eup %315 }
  0x43   : > { %v318_v37 = vpop.eup %317  ;;  %v226_v38 = vmul.f32 %v316_v36, %v192_v6 }
  0x44   : > { %v227_v39 = vmul.f32 %v318_v37, %v193_v7 }
  0x45   : > { %228 = vst [vmem:[%s172_s25] sm:$0xff] %v226_v38 }
  0x46   : > { %229 = vst [vmem:[%s172_s25 + $0x8] sm:$0xff] %v227_v39 }
  0x47 PF: > { %s13_s12 = sadd.s32 1, %s325_s12  }
  0x48   : > { %p10_p4 = scmp.ge.s32.totalorder %s13_s12, 4  }
  0x4a   :  { %12 = sbr.rel (!%p10_p4) target bundleno = 1 (0x1), region = 62 }

// kernel: conv_module_forward.2
= control target key start
LH: loop header
LB: loop body
LE: loop exit
PB: predicated region body
PF: predicated region fallthrough
CT: control target
= control target key end

     0   :  { %s4675_s15 = smov 0   ;;  %s5967_s0 = inlined_call_operand.vmem [shape: f32[2,18,18,4], index: 0, kind: input, shape index: {}]   ;;  %s5968_s1 = inlined_call_operand.vmem [shape: f32[3,3,4,8], index: 1, kind: input, shape index: {}]   ;;  %s5969_s2 = inlined_call_operand.vmem [shape: f32[512,8], index: 2, kind: output, shape index: {0}]   ;;  %s5970_s3 = inlined_call_operand.vmem [shape: f32[2,1,8], index: 3, kind: output, shape index: {1}]   ;;  %s5971_s4 = inlined_call_operand.vmem [shape: f32[2,1,8], index: 4, kind: output, shape index: {2}]  }
   0x1 LB: > { %s4681_s16 = sadd.s32 4294967295, %s4648_s15   ;;  %p3325_p0 = scmp.ge.s32.totalorder %s4648_s15, 1  ;;  %s4648_s15 = sphi %s4675_s15, %s15_s15  }
   0x2   : > { %p167_p1 = scmp.lt.s32.totalorder %s4648_s15, 3 }
   0x4   : > { %p168_p2 = pnand %p3325_p0, %p167_p1 }
   0x6   : > { %171 = sbr.rel (%p168_p2) target bundleno = 545 (0x221), region = 28 }
   0xd   : > { %v271_v0 = vld [vmem:[%s5968_s1 + $0x4] sm:$0xf]  ;;  %vm473_vm0 = vcmask 1043456   ;;  %v4691_v1 = vld [vmem:[%s5968_s1 + $0x10] sm:$0xf]  ;;  %p199_p3 = scmp.lt.s32.totalorder %s4681_s16, 1 }
   0xe   : > { %3925 = vmatprep.subr.msk.mxu1 %vm473_vm0, %v271_v0  ;;  %4125 = vmatprep.subr.msk.mxu0 %vm473_vm0, %v4691_v1  ;;  %v270_v2 = vld [vmem:[%s5968_s1] sm:$0xf]  ;;  %v275_v3 = vld [vmem:[%s5968_s1 + $0x14] sm:$0xf]  ;;  %vm327_vm1 = vcmask 1046528   ;;  %vm408_vm2 = vcmask 31744  }
   0xf   : > { %3926 = vmatpush3.msk.msra.mxu1 %vm473_vm0, %v271_v0  ;;  %4126 = vmatpush3.msk.msra.mxu0 %vm473_vm0, %v4691_v1  ;;  %s4707_s25 = scalar_select %p199_p3, %s4681_s16, 1  ;;  %v4780_v33 = vld [vmem:[%s5968_s1 + $0x18] sm:$0xf]  ;;  %v4790_v35 = vld [vmem:[%s5968_s1 + $0x8] sm:$0xf]  ;;  %vm994_vm3 = vcmask 1045504  }
  0x10   : > { %3975 = vmatprep.subr.msk.mxu1 %vm473_vm0, %v270_v2  ;;  %4175 = vmatprep.subr.msk.mxu0 %vm473_vm0, %v275_v3  ;;  %s3327_s14 = sshll.u32 %s4681_s16, 5  ;;  %vm3009_vm4 = vcmask 64512   ;;  %vm3111_vm5 = vcmask 57344  }
  0x11   : > { %s4633_s26 = smul.u32 432, %s4707_s25  ;;  %p205_p4 = scmp.lt.s32.totalorder %s3327_s14, 63 }
  0x12   : > { %s212_s22 = scalar_lea.vmem %s5970_s3, %s4707_s25 }
  0x13   : > { %s4715_s29 = scalar_lea.vmem %s5967_s0, %s4633_s26  ;;  %s6147_s14 = smov (!%p205_p4, %s3327_s14), 63 }
  0x14   : > { %v4718_v4 = vld [vmem:[%s4715_s29] sm:$0xff]  ;;  %v4721_v5 = vld [vmem:[%s4715_s29 + $0x8] sm:$0xff]  ;;  %v4724_v6 = vld [vmem:[%s4715_s29 + $0x18] sm:$0xff]  ;;  %s3328_s17 = sshll.u32 %s6147_s14, 3  ;;  %s215_s26 = scalar_lea.vmem %s5971_s4, %s4707_s25 }
  0x15   : > { %6045 = vst [vmem:[#allocation2_spill] sm:$0xff] %v4724_v6  ;;  %v328_v7 = vrot.slane %v4718_v4, 1  ;;  %v329_v8 = vrot.slane %v4721_v5, 1  ;;  %v4729_v9 = vld [vmem:[%s4715_s29 + $0x20] sm:$0xff]  ;;  %v333_v10 = vrot.slane %v4724_v6, 1  ;;  %v4741_v15 = vld [vmem:[%s4715_s29 + $0x30] sm:$0xff]  ;;  %s5818_s20 = scalar_lea.vmem %s5969_s2, %s3328_s17 }
  0x16   : > { %6046 = vst [vmem:[#allocation3_spill] sm:$0xff] %v4729_v9  ;;  %v4733_v11 = vld [vmem:[%s4715_s29 + $0x10] sm:$0x3]  ;;  %v334_v12 = vrot.slane %v4729_v9, 1  ;;  %v4738_v14 = vld [vmem:[%s4715_s29 + $0x28] sm:$0x3] }
  0x17   : > { %v331_v13 = vrot.slane %v4733_v11, 1  ;;  %v330_v16 = vsel %vm327_vm1, %v328_v7, %v329_v8  ;;  %v336_v17 = vrot.slane %v4738_v14, 1  ;;  %v4746_v18 = vld [vmem:[%s4715_s29 + $0x38] sm:$0xff]  ;;  %v338_v19 = vrot.slane %v4741_v15, 1  ;;  %v4750_v20 = vld [vmem:[%s4715_s29 + $0x40] sm:$0x3] }
  0x18   : > { %3927 = vmatprep.mubr.msk.f32.mxu1 %vm408_vm2, %v330_v16  ;;  %v335_v21 = vsel %vm327_vm1, %v333_v10, %v334_v12  ;;  %v339_v23 = vrot.slane %v4746_v18, 1  ;;  %v341_v24 = vrot.slane %v4750_v20, 1  ;;  %v4758_v25 = vld [vmem:[%s4715_s29 + $0x48] sm:$0xff]  ;;  %v4761_v26 = vld [vmem:[%s4715_s29 + $0x50] sm:$0xff]  ;;  %v4764_v27 = vld [vmem:[%s4715_s29 + $0x58] sm:$0x3] }
  0x19   : > { %v332_v22 = vsel %vm327_vm1, %v329_v8, %v331_v13  ;;  %4127 = vmatprep.mubr.msk.f32.mxu0 %vm408_vm2, %v335_v21  ;;  %v337_v28 = vsel %vm327_vm1, %v334_v12, %v336_v17  ;;  %v343_v29 = vrot.slane %v4758_v25, 1  ;;  %v344_v30 = vrot.slane %v4761_v26, 1  ;;  %v4772_v31 = vld [vmem:[%s4715_s29 + $0x60] sm:$0xff]  ;;  %v4775_v32 = vld [vmem:[%s4715_s29 + $0x68] sm:$0xff]  ;;  %v4806_v41 = vld [vmem:[%s4715_s29 + $0x70] sm:$0x3] }
  0x1a   : > { %3928 = vmatmul.mubr.msk.f32.vlgmr.msra.gmra.mrb[0].mxu1 %vm408_vm2, %v332_v22  ;;  %4128 = vmatmul.mubr.msk.f32.vlgmr.msra.gmra.mrb[0].mxu0 %vm408_vm2, %v337_v28  ;;  %v4785_v34 = vsel %vm327_vm1, %v338_v19, %v339_v23  ;;  %v4795_v36 = vsel %vm327_vm1, %v339_v23, %v341_v24  ;;  %v346_v37 = vrot.slane %v4764_v27, 1  ;;  %v348_v39 = vrot.slane %v4772_v31, 1  ;;  %v4812_v42 = vld [vmem:[%s4715_s29 + $0x78] sm:$0xff]  ;;  %v4815_v43 = vld [vmem:[%s4715_s29 + $0x80] sm:$0xff]  ;;  %v4835_v49 = vld [vmem:[%s4715_s29 + $0x88] sm:$0x3] }
  0x1b   : > { %3976 = vmatpush3.msk.msra.mxu1 %vm473_vm0, %v270_v2  ;;  %6047 = vst [vmem:[#allocation4_spill] sm:$0xff] %v4785_v34  ;;  %4176 = vmatpush3.msk.msra.mxu0 %vm473_vm0, %v275_v3  ;;  %6048 = vst [vmem:[#allocation5_spill] sm:$0xff] %v4795_v36  ;;  %v4801_v38 = vsel %vm327_vm1, %v343_v29, %v344_v30  ;;  %v349_v40 = vrot.slane %v4775_v32, 1  ;;  %v351_v45 = vrot.slane %v4806_v41, 1  ;;  %v353_v47 = vrot.slane %v4812_v42, 1  ;;  %v4840_v50 = vld [vmem:[%s4715_s29 + $0x90] sm:$0xff] }
  0x1c   : > { %3930 = vmatprep.mubr.msk.f32.mxu1 %vm408_vm2, %v335_v21  ;;  %4130 = vmatprep.mubr.msk.f32.mxu0 %vm408_vm2, %v4785_v34  ;;  %6049 = vst [vmem:[#allocation6_spill] sm:$0xff] %v4801_v38  ;;  %v4826_v44 = vsel %vm327_vm1, %v344_v30, %v346_v37  ;;  %v354_v48 = vrot.slane %v4815_v43, 1  ;;  %v4843_v51 = vld [vmem:[%s4715_s29 + $0x98] sm:$0xff]  ;;  %v356_v53 = vrot.slane %v4835_v49, 1  ;;  %v358_v55 = vrot.slane %v4840_v50, 1  ;;  %v4866_v58 = vld [vmem:[%s4715_s29 + $0xa8] sm:$0xff] }
  0x1d   : > { %4225 = vmatprep.subr.msk.mxu0 %vm473_vm0, %v4780_v33  ;;  %4025 = vmatprep.subr.msk.mxu1 %vm473_vm0, %v4790_v35  ;;  %6050 = vst [vmem:[#allocation7_spill] sm:$0xff] %v4826_v44  ;;  %v4830_v46 = vsel %vm327_vm1, %v348_v39, %v349_v40  ;;  %v4852_v52 = vsel %vm327_vm1, %v349_v40, %v351_v45  ;;  %v359_v56 = vrot.slane %v4843_v51, 1  ;;  %v4861_v57 = vld [vmem:[%s4715_s29 + $0xa0] sm:$0x3]  ;;  %v4869_v59 = vld [vmem:[%s4715_s29 + $0xb0] sm:$0xff]  ;;  %v363_v63 = vrot.slane %v4866_v58, 1 }
  0x1e   : > { %3931 = vmatmul.mubr.msk.f32.gmra.mrb[2].mxu1 %vm408_vm2, %v337_v28  ;;  %4131 = vmatmul.mubr.msk.f32.gmra.mrb[2].mxu0 %vm408_vm2, %v4795_v36  ;;  %6051 = vst [vmem:[#allocation8_spill] sm:$0xff] %v4830_v46  ;;  %6052 = vst [vmem:[#allocation9_spill] sm:$0xff] %v4852_v52  ;;  %v4856_v54 = vsel %vm327_vm1, %v353_v47, %v354_v48  ;;  %v4878_v60 = vsel %vm327_vm1, %v354_v48, %v356_v53  ;;  %v361_v61 = vrot.slane %v4861_v57, 1  ;;  %v4887_v2 = vld [vmem:[%s4715_s29 + $0xb8] sm:$0x3]  ;;  %v4892_v3 = vld [vmem:[%s4715_s29 + $0xc0] sm:$0xff] }
  0x1f   : > { %3933 = vmatprep.mubr.msk.f32.mxu1 %vm408_vm2, %v4785_v34  ;;  %4133 = vmatprep.mubr.msk.f32.mxu0 %vm408_vm2, %v4801_v38  ;;  %6053 = vst [vmem:[#allocation10_spill] sm:$0xff] %v4856_v54  ;;  %6054 = vst [vmem:[#allocation11_spill] sm:$0xff] %v4878_v60  ;;  %v4882_v62 = vsel %vm327_vm1, %v358_v55, %v359_v56  ;;  %v364_v0 = vrot.slane %v4869_v59, 1  ;;  %v4895_v7 = vld [vmem:[%s4715_s29 + $0xc8] sm:$0xff]  ;;  %v366_v10 = vrot.slane %v4887_v2, 1  ;;  %v368_v13 = vrot.slane %v4892_v3, 1 }
  0x20   : > { %6055 = vst [vmem:[#allocation12_spill] sm:$0xff] %v4882_v62  ;;  %v4904_v8 = vsel %vm327_vm1, %v359_v56, %v361_v61  ;;  %v369_v16 = vrot.slane %v4895_v7, 1  ;;  %v4913_v17 = vld [vmem:[%s4715_s29 + $0xd0] sm:$0x3]  ;;  %v1000_v23 = vrot.slane %v4724_v6, 2  ;;  %v1001_v24 = vrot.slane %v4729_v9, 2 }
  0x21   : > { %6056 = vst [vmem:[#allocation13_spill] sm:$0xff] %v4904_v8  ;;  %v4908_v12 = vsel %vm327_vm1, %v363_v63, %v364_v0  ;;  %v4924_v19 = vsel %vm327_vm1, %v364_v0, %v366_v10  ;;  %v371_v21 = vrot.slane %v4913_v17, 1  ;;  %v4933_v28 = vld [vmem:[%s4715_s29 + $0xd8] sm:$0xff]  ;;  %v4936_v29 = vld [vmem:[%s4715_s29 + $0xe0] sm:$0xff]  ;;  %v1003_v30 = vrot.slane %v4738_v14, 2  ;;  %v4961_v53 = vld [vmem:[%s4715_s29 + $0xf0] sm:$0xff] }
  0x22   : > { %3934 = vmatmul.mubr.msk.f32.gmra.mrb[4].mxu1 %vm408_vm2, %v4795_v36  ;;  %4134 = vmatmul.mubr.msk.f32.gmra.mrb[4].mxu0 %vm408_vm2, %v4826_v44  ;;  %6057 = vst [vmem:[#allocation14_spill] sm:$0xff] %v4908_v12  ;;  %6058 = vst [vmem:[#allocation15_spill] sm:$0xff] %v4924_v19  ;;  %v4928_v22 = vsel %vm327_vm1, %v368_v13, %v369_v16  ;;  %v373_v39 = vrot.slane %v4933_v28, 1  ;;  %v374_v40 = vrot.slane %v4936_v29, 1  ;;  %v4953_v45 = vld [vmem:[%s4715_s29 + $0xe8] sm:$0x3] }
  0x23   : > { %3936 = vmatprep.mubr.msk.f32.mxu1 %vm408_vm2, %v4801_v38  ;;  %4136 = vmatprep.mubr.msk.f32.mxu0 %vm408_vm2, %v4830_v46  ;;  %6059 = vst [vmem:[#allocation16_spill] sm:$0xff] %v4928_v22  ;;  %v4948_v37 = vsel %vm327_vm1, %v369_v16, %v371_v21  ;;  %v4956_v47 = vsel %vm994_vm3, %v1000_v23, %v1001_v24  ;;  %v1005_v48 = vrot.slane %v4741_v15, 2  ;;  %v1006_v14 = vrot.slane %v4746_v18, 2  ;;  %v4964_v55 = vld [vmem:[%s4715_s29 + $0xf8] sm:$0xff]  ;;  %v4985_v16 = vld [vmem:[%s4715_s29 + $0x100] sm:$0x3] }
  0x24   : > { %6060 = vst [vmem:[#allocation17_spill] sm:$0xff] %v4948_v37  ;;  %v376_v56 = vrot.slane %v4953_v45, 1  ;;  %v1008_v61 = vrot.slane %v4750_v20, 2  ;;  %v4977_v63 = vsel %vm994_vm3, %v1001_v24, %v1003_v30  ;;  %v4980_v0 = vsel %vm327_vm1, %v373_v39, %v374_v40  ;;  %v4996_v24 = vld [vmem:[%s4715_s29 + $0x110] sm:$0xff]  ;;  %v5003_v30 = vld [vmem:[%s5968_s1 + $0x1c] sm:$0xf] }
  0x25   : > { %6061 = vst [vmem:[#allocation18_spill] sm:$0xff] %v4980_v0  ;;  %v378_v10 = vrot.slane %v4961_v53, 1  ;;  %v379_v13 = vrot.slane %v4964_v55, 1  ;;  %v4988_v21 = vsel %vm994_vm3, %v1005_v48, %v1006_v14  ;;  %v1010_v20 = vrot.slane %v4758_v25, 2  ;;  %v5099_v36 = vld [vmem:[%s4715_s29 + $0x148] sm:$0x3] }
  0x26   : > { %3937 = vmatmul.mubr.msk.f32.gmra.mrb[6].mxu1 %vm408_vm2, %v4826_v44  ;;  %4137 = vmatmul.mubr.msk.f32.gmra.mrb[6].mxu0 %vm408_vm2, %v4852_v52  ;;  %v1011_v23 = vrot.slane %v4761_v26, 2  ;;  %v5010_v39 = vsel %vm327_vm1, %v374_v40, %v376_v56  ;;  %v5013_v48 = vsel %vm994_vm3, %v1006_v14, %v1008_v61  ;;  %v384_v40 = vrot.slane %v4996_v24, 1  ;;  %v5027_v56 = vld [vmem:[%s4715_s29 + $0x118] sm:$0x3] }
  0x27   : > { %3939 = vmatprep.mubr.msk.f32.mxu1 %vm408_vm2, %v4830_v46  ;;  %4139 = vmatprep.mubr.msk.f32.mxu0 %vm408_vm2, %v4856_v54  ;;  %6062 = vst [vmem:[#allocation19_spill] sm:$0xff] %v5010_v39  ;;  %6063 = vst [vmem:[#allocation20_spill] sm:$0xff] %v5013_v48  ;;  %v1015_v61 = vrot.slane %v4772_v31, 2  ;;  %v5072_v46 = vld [vmem:[%s4715_s29 + $0x138] sm:$0xff]  ;;  %v1023_v44 = vrot.slane %v4835_v49, 2  ;;  %v1028_v34 = vrot.slane %v4861_v57, 2 }
  0x28   : > { %v5030_v14 = vsel %vm994_vm3, %v1010_v20, %v1011_v23  ;;  %v386_v20 = vrot.slane %v5027_v56, 1  ;;  %v393_v38 = vrot.slane %v5072_v46, 1  ;;  %v1030_v57 = vrot.slane %v4866_v58, 2 }
  0x29   : > { %6065 = vst [vmem:[#allocation22_spill] sm:$0xff] %v5030_v14 }
  0x2a   : > { %3940 = vmatmul.mubr.msk.f32.gmra.mrb[8].mxu1 %vm408_vm2, %v4852_v52  ;;  %4140 = vmatmul.mubr.msk.f32.gmra.mrb[8].mxu0 %vm408_vm2, %v4878_v60  ;;  %v5064_v52 = vld [vmem:[%s4715_s29 + $0x130] sm:$0x3] }
  0x2b   : > { %3942 = vmatprep.mubr.msk.f32.mxu1 %vm408_vm2, %v4856_v54  ;;  %4142 = vmatprep.mubr.msk.f32.mxu0 %vm408_vm2, %v4882_v62 }
  0x2e   : > { %3943 = vmatmul.mubr.msk.f32.gmra.mrb[10].mxu1 %vm408_vm2, %v4878_v60  ;;  %4143 = vmatmul.mubr.msk.f32.gmra.mrb[10].mxu0 %vm408_vm2, %v4904_v8 }
  0x2f   : > { %3945 = vmatprep.mubr.msk.f32.mxu1 %vm408_vm2, %v4882_v62  ;;  %4145 = vmatprep.mubr.msk.f32.mxu0 %vm408_vm2, %v4908_v12  ;;  %v1018_v62 = vrot.slane %v4806_v41, 2  ;;  %v1020_v41 = vrot.slane %v4812_v42, 2 }
  0x32   : > { %3946 = vmatmul.mubr.msk.f32.gmra.mrb[12].mxu1 %vm408_vm2, %v4904_v8  ;;  %4146 = vmatmul.mubr.msk.f32.gmra.mrb[12].mxu0 %vm408_vm2, %v4924_v19  ;;  %v5035_v8 = vld [vmem:[%s4715_s29 + $0x120] sm:$0xff] }
  0x33   : > { %3948 = vmatprep.mubr.msk.f32.mxu1 %vm408_vm2, %v4908_v12  ;;  %4148 = vmatprep.mubr.msk.f32.mxu0 %vm408_vm2, %v4928_v22  ;;  %v1013_v12 = vrot.slane %v4764_v27, 2  ;;  %v388_v54 = vrot.slane %v5035_v8, 1 }
  0x35   : > { %v5056_v60 = vsel %vm994_vm3, %v1011_v23, %v1013_v12  ;;  %v5075_v12 = vld [vmem:[%s4715_s29 + $0x140] sm:$0xff] }
  0x36   : > { %3949 = vmatmul.mubr.msk.f32.gmra.mrb[14].mxu1 %vm408_vm2, %v4924_v19  ;;  %4149 = vmatmul.mubr.msk.f32.gmra.mrb[14].mxu0 %vm408_vm2, %v4948_v37  ;;  %v5021_v19 = vsel %vm327_vm1, %v378_v10, %v379_v13  ;;  %v5038_v10 = vld [vmem:[%s4715_s29 + $0x128] sm:$0xff]  ;;  %6067 = vst [vmem:[#allocation24_spill] sm:$0xff] %v5056_v60 }
  0x37   : > { %3951 = vmatprep.mubr.msk.f32.mxu1 %vm408_vm2, %v4928_v22  ;;  %4177 = vmatprep.mubr.msk.f32.mxu0 %vm408_vm2, %v4956_v47  ;;  %v4993_v22 = vld [vmem:[%s4715_s29 + $0x108] sm:$0xff]  ;;  %6064 = vst [vmem:[#allocation21_spill] sm:$0xff] %v5021_v19 }
  0x3a   : > { %3952 = vmatmul.mubr.msk.f32.gmra.mrb[16].mxu1 %vm408_vm2, %v4948_v37  ;;  %4178 = vmatmul.mubr.msk.f32.vlgmr.msra.gmra.mrb[0].mxu0 %vm408_vm2, %v4977_v63  ;;  %v381_v37 = vrot.slane %v4985_v16, 1 }
  0x3b   : > { %3954 = vmatprep.mubr.msk.f32.mxu1 %vm408_vm2, %v4980_v0  ;;  %4226 = vmatpush3.msk.msra.mxu0 %vm473_vm0, %v4780_v33  ;;  %v383_v0 = vrot.slane %v4993_v22, 1  ;;  %v1016_v33 = vrot.slane %v4775_v32, 2 }
  0x3c   : > { %4180 = vmatprep.mubr.msk.f32.mxu0 %vm408_vm2, %v4988_v21  ;;  %4275 = vmatprep.subr.msk.mxu0 %vm473_vm0, %v5003_v30  ;;  %v5049_v27 = vsel %vm327_vm1, %v379_v13, %v381_v37  ;;  %v1021_v13 = vrot.slane %v4815_v43, 2 }
  0x3d   : > { %6066 = vst [vmem:[#allocation23_spill] sm:$0xff] %v5049_v27  ;;  %v5067_v37 = vsel %vm994_vm3, %v1015_v61, %v1016_v33  ;;  %v5087_v23 = vsel %vm994_vm3, %v1016_v33, %v1018_v62  ;;  %v391_v61 = vrot.slane %v5064_v52, 1  ;;  %v1025_v62 = vrot.slane %v4840_v50, 2 }
  0x3e   : > { %3955 = vmatmul.mubr.msk.f32.gmra.mrb[18].mxu1 %vm408_vm2, %v5010_v39  ;;  %4181 = vmatmul.mubr.msk.f32.gmra.mrb[2].mxu0 %vm408_vm2, %v5013_v48  ;;  %v5059_v39 = vsel %vm327_vm1, %v383_v0, %v384_v40  ;;  %6069 = vst [vmem:[#allocation26_spill] sm:$0xff] %v5067_v37  ;;  %v5084_v0 = vsel %vm327_vm1, %v384_v40, %v386_v20  ;;  %6071 = vst [vmem:[#allocation28_spill] sm:$0xff] %v5087_v23  ;;  %v1026_v33 = vrot.slane %v4843_v51, 2  ;;  %v5107_v20 = vld [vmem:[%s4715_s29 + $0x150] sm:$0xff]  ;;  %v5169_v48 = vld [vmem:[%s4715_s29 + $0x178] sm:$0x3] }
  0x3f   : > { %3957 = vmatprep.mubr.msk.f32.mxu1 %vm408_vm2, %v5021_v19  ;;  %4183 = vmatprep.mubr.msk.f32.mxu0 %vm408_vm2, %v5030_v14  ;;  %6068 = vst [vmem:[#allocation25_spill] sm:$0xff] %v5059_v39  ;;  %v389_v19 = vrot.slane %v5038_v10, 1  ;;  %6070 = vst [vmem:[#allocation27_spill] sm:$0xff] %v5084_v0  ;;  %v5102_v40 = vsel %vm994_vm3, %v1020_v41, %v1021_v13  ;;  %v396_v41 = vrot.slane %v5099_v36, 1 }
  0x40   : > { %6073 = vst [vmem:[#allocation30_spill] sm:$0xff] %v5102_v40 }
  0x41   : > { %v5119_v49 = vsel %vm327_vm1, %v389_v19, %v391_v61  ;;  %v1031_v61 = vrot.slane %v4869_v59, 2 }
  0x42   : > { %3958 = vmatmul.mubr.msk.f32.gmra.mrb[20].mxu1 %vm408_vm2, %v5049_v27  ;;  %4184 = vmatmul.mubr.msk.f32.gmra.mrb[4].mxu0 %vm408_vm2, %v5056_v60  ;;  %v5093_v27 = vsel %vm327_vm1, %v388_v54, %v389_v19  ;;  %v5110_v54 = vld [vmem:[%s4715_s29 + $0x158] sm:$0xff]  ;;  %6074 = vst [vmem:[#allocation31_spill] sm:$0xff] %v5119_v49  ;;  %v5134_v60 = vld [vmem:[%s4715_s29 + $0x160] sm:$0x3]  ;;  %v5137_v19 = vsel %vm994_vm3, %v1025_v62, %v1026_v33 }
  0x43   : > { %3960 = vmatprep.mubr.msk.f32.mxu1 %vm408_vm2, %v5059_v39  ;;  %4186 = vmatprep.mubr.msk.f32.mxu0 %vm408_vm2, %v5067_v37  ;;  %6072 = vst [vmem:[#allocation29_spill] sm:$0xff] %v5093_v27  ;;  %v394_v39 = vrot.slane %v5075_v12, 1  ;;  %v5126_v37 = vsel %vm994_vm3, %v1021_v13, %v1023_v44  ;;  %v5145_v44 = vld [vmem:[%s4715_s29 + $0x170] sm:$0xff]  ;;  %v5157_v13 = vsel %vm994_vm3, %v1026_v33, %v1028_v34  ;;  %v401_v62 = vrot.slane %v5134_v60, 1 }
  0x44   : > { %6075 = vst [vmem:[#allocation32_spill] sm:$0xff] %v5126_v37  ;;  %6077 = vst [vmem:[#allocation34_spill] sm:$0xff] %v5145_v44  ;;  %v1035_v34 = vrot.slane %v4892_v3, 2  ;;  %v1036_v33 = vrot.slane %v4895_v7, 2 }
  0x45   : > { %6079 = vst [vmem:[#allocation36_spill] sm:$0xff] %v5157_v13 }
  0x46   : > { %3961 = vmatmul.mubr.msk.f32.gmra.mrb[22].mxu1 %vm408_vm2, %v5084_v0  ;;  %4187 = vmatmul.mubr.msk.f32.gmra.mrb[6].mxu0 %vm408_vm2, %v5087_v23  ;;  %v5129_v0 = vsel %vm327_vm1, %v393_v38, %v394_v39  ;;  %v398_v23 = vrot.slane %v5107_v20, 1  ;;  %v5154_v38 = vsel %vm327_vm1, %v394_v39, %v396_v41  ;;  %v5172_v39 = vsel %vm994_vm3, %v1030_v57, %v1031_v61 }
  0x47   : > { %3963 = vmatprep.mubr.msk.f32.mxu1 %vm408_vm2, %v5093_v27  ;;  %4189 = vmatprep.mubr.msk.f32.mxu0 %vm408_vm2, %v5102_v40  ;;  %6076 = vst [vmem:[#allocation33_spill] sm:$0xff] %v5129_v0  ;;  %v399_v27 = vrot.slane %v5110_v54, 1  ;;  %v5142_v40 = vld [vmem:[%s4715_s29 + $0x168] sm:$0xff]  ;;  %6078 = vst [vmem:[#allocation35_spill] sm:$0xff] %v5154_v38 }
  0x49   : > { %v5163_v14 = vsel %vm327_vm1, %v398_v23, %v399_v27  ;;  %v406_v23 = vrot.slane %v5169_v48, 1 }
  0x4a   : > { %3964 = vmatmul.mubr.msk.f32.gmra.mrb[24].mxu1 %vm408_vm2, %v5119_v49  ;;  %4190 = vmatmul.mubr.msk.f32.gmra.mrb[8].mxu0 %vm408_vm2, %v5126_v37  ;;  %6080 = vst [vmem:[#allocation37_spill] sm:$0xff] %v5163_v14  ;;  %v1033_v49 = vrot.slane %v4887_v2, 2  ;;  %v403_v37 = vrot.slane %v5142_v40, 1  ;;  %v5183_v2 = vsel %vm327_vm1, %v399_v27, %v401_v62  ;;  %v1041_v27 = vrot.slane %v4936_v29, 2 }
  0x4b   : > { %3966 = vmatprep.mubr.msk.f32.mxu1 %vm408_vm2, %v5129_v0  ;;  %4192 = vmatprep.mubr.msk.f32.mxu0 %vm408_vm2, %v5137_v19  ;;  %v404_v0 = vrot.slane %v5145_v44, 1  ;;  %6081 = vst [vmem:[#allocation38_spill] sm:$0xff] %v5183_v2  ;;  %v1045_v62 = vrot.slane %v4961_v53, 2 }
  0x4c   : > { %v5189_v41 = vsel %vm994_vm3, %v1031_v61, %v1033_v49  ;;  %v1043_v49 = vrot.slane %v4953_v45, 2 }
  0x4d   : > { %v5192_v57 = vsel %vm327_vm1, %v403_v37, %v404_v0  ;;  %v5207_v37 = vsel %vm327_vm1, %v404_v0, %v406_v23  ;;  %v5242_v23 = vld [vmem:[%s5968_s1 + $0xc] sm:$0xf] }
  0x4e   : > { %3967 = vmatmul.mubr.msk.f32.gmra.mrb[26].mxu1 %vm408_vm2, %v5154_v38  ;;  %4193 = vmatmul.mubr.msk.f32.gmra.mrb[10].mxu0 %vm408_vm2, %v5157_v13  ;;  %6082 = vst [vmem:[#allocation39_spill] sm:$0xff] %v5192_v57  ;;  %v1038_v38 = vrot.slane %v4913_v17, 2  ;;  %v5196_v13 = vsel %vm994_vm3, %v1035_v34, %v1036_v33  ;;  %6083 = vst [vmem:[#allocation40_spill] sm:$0xff] %v5207_v37  ;;  %v1046_v34 = vrot.slane %v4964_v55, 2 }
  0x4f   : > { %3969 = vmatprep.mubr.msk.f32.mxu1 %vm408_vm2, %v5163_v14  ;;  %4195 = vmatprep.mubr.msk.f32.mxu0 %vm408_vm2, %v5172_v39  ;;  %v1040_v14 = vrot.slane %v4933_v28, 2  ;;  %v5229_v45 = vsel %vm994_vm3, %v1041_v27, %v1043_v49 }
  0x50   : > { %v5212_v17 = vsel %vm994_vm3, %v1036_v33, %v1038_v38  ;;  %v5233_v0 = vsel %vm994_vm3, %v1045_v62, %v1046_v34  ;;  %v1050_v38 = vrot.slane %v4993_v22, 2  ;;  %v1051_v33 = vrot.slane %v4996_v24, 2 }
  0x51   : > { %v5216_v61 = vsel %vm994_vm3, %v1040_v14, %v1041_v27  ;;  %v1048_v14 = vrot.slane %v4985_v16, 2  ;;  %v1053_v27 = vrot.slane %v5027_v56, 2  ;;  %v1055_v62 = vrot.slane %v5035_v8, 2 }
  0x52   : > { %3970 = vmatmul.mubr.msk.f32.gmra.mrb[28].mxu1 %vm408_vm2, %v5183_v2  ;;  %4196 = vmatmul.mubr.msk.f32.gmra.mrb[12].mxu0 %vm408_vm2, %v5189_v41  ;;  %v5257_v49 = vsel %vm994_vm3, %v1050_v38, %v1051_v33  ;;  %v1060_v38 = vrot.slane %v5072_v46, 2  ;;  %v1071_v2 = vrot.slane %v5145_v44, 2 }
  0x53   : > { %3972 = vmatprep.mubr.msk.f32.mxu1 %vm408_vm2, %v5192_v57  ;;  %4198 = vmatprep.mubr.msk.f32.mxu0 %vm408_vm2, %v5196_v13  ;;  %v5253_v16 = vsel %vm994_vm3, %v1046_v34, %v1048_v14  ;;  %6084 = vst [vmem:[#allocation41_spill] sm:$0xff] %v5257_v49  ;;  %v5272_v56 = vsel %vm994_vm3, %v1051_v33, %v1053_v27  ;;  %v1058_v34 = vrot.slane %v5064_v52, 2  ;;  %v1063_v33 = vrot.slane %v5099_v36, 2 }
  0x54   : > { %v1066_v57 = vrot.slane %v5110_v54, 2 }
  0x56   : > { %3973 = vmatmul.mubr.msk.f32.gmra.mrb[30].mxu1 %vm408_vm2, %v5207_v37  ;;  %4199 = vmatmul.mubr.msk.f32.gmra.mrb[14].mxu0 %vm408_vm2, %v5212_v17  ;;  %v1061_v37 = vrot.slane %v5075_v12, 2 }
  0x57   : > { %3977 = vmatprep.mubr.msk.f32.mxu1 %vm408_vm2, %v4718_v4  ;;  %4201 = vmatprep.mubr.msk.f32.mxu0 %vm408_vm2, %v5216_v61 }
  0x58   : > { %v5293_v27 = vsel %vm994_vm3, %v1060_v38, %v1061_v37  ;;  %v5306_v36 = vsel %vm994_vm3, %v1061_v37, %v1063_v33  ;;  %v1070_v38 = vrot.slane %v5142_v40, 2  ;;  %v1073_v37 = vrot.slane %v5169_v48, 2 }
  0x59   : > { %6086 = vst [vmem:[#allocation43_spill] sm:$0xff] %v5293_v27  ;;  %6087 = vst [vmem:[#allocation44_spill] sm:$0xff] %v5306_v36 }
  0x5a   : > { %3978 = vmatmul.mubr.msk.f32.vlgmr.msra.gmra.mrb[0].mxu1 %vm408_vm2, %v4721_v5  ;;  %4202 = vmatmul.mubr.msk.f32.gmra.mrb[16].mxu0 %vm408_vm2, %v5229_v45  ;;  %v5333_v33 = vsel %vm994_vm3, %v1070_v38, %v1071_v2  ;;  %v5349_v48 = vsel %vm994_vm3, %v1071_v2, %v1073_v37  ;;  %v996_v38 = vrot.slane %v4721_v5, 2  ;;  %v998_v37 = vrot.slane %v4733_v11, 2  ;;  %v6094_v5 = vld [vmem:[#allocation20_spill] sm:$0xff]  ;;  %v6095_v11 = vld [vmem:[#allocation22_spill] sm:$0xff] }
  0x5b   : > { %4026 = vmatpush3.msk.msra.mxu1 %vm473_vm0, %v4790_v35  ;;  %3980 = vmatprep.mubr.msk.f32.mxu1 %vm408_vm2, %v4724_v6  ;;  %v1056_v35 = vrot.slane %v5038_v10, 2  ;;  %v5320_v6 = vld [vmem:[%s4715_s29 + $0x188] sm:$0xff]  ;;  %6090 = vst [vmem:[#allocation47_spill] sm:$0xff] %v5333_v33  ;;  %6091 = vst [vmem:[#allocation48_spill] sm:$0xff] %v5349_v48 }
  0x5c   : > { %4204 = vmatprep.mubr.msk.f32.mxu0 %vm408_vm2, %v5233_v0  ;;  %4075 = vmatprep.subr.msk.mxu1 %vm473_vm0, %v5242_v23 }
  0x5d   : > { %v5276_v14 = vsel %vm994_vm3, %v1055_v62, %v1056_v35  ;;  %v5289_v52 = vsel %vm994_vm3, %v1056_v35, %v1058_v34  ;;  %v1065_v62 = vrot.slane %v5107_v20, 2  ;;  %v1068_v35 = vrot.slane %v5134_v60, 2 }
  0x5e   : > { %3981 = vmatmul.mubr.msk.f32.gmra.mrb[2].mxu1 %vm408_vm2, %v4729_v9  ;;  %4205 = vmatmul.mubr.msk.f32.gmra.mrb[18].mxu0 %vm408_vm2, %v5253_v16  ;;  %6085 = vst [vmem:[#allocation42_spill] sm:$0xff] %v5289_v52  ;;  %v5317_v9 = vld [vmem:[%s4715_s29 + $0x180] sm:$0xff] }
  0x5f   : > { %3983 = vmatprep.mubr.msk.f32.mxu1 %vm408_vm2, %v4741_v15  ;;  %4207 = vmatprep.mubr.msk.f32.mxu0 %vm408_vm2, %v5257_v49  ;;  %v5310_v34 = vsel %vm994_vm3, %v1065_v62, %v1066_v57  ;;  %v5329_v60 = vsel %vm994_vm3, %v1066_v57, %v1068_v35  ;;  %v1935_v62 = vrot.slane %v5317_v9, 2 }
  0x60   : > { %6088 = vst [vmem:[#allocation45_spill] sm:$0xff] %v5310_v34  ;;  %6089 = vst [vmem:[#allocation46_spill] sm:$0xff] %v5329_v60 }
  0x62   : > { %3984 = vmatmul.mubr.msk.f32.gmra.mrb[4].mxu1 %vm408_vm2, %v4746_v18  ;;  %4208 = vmatmul.mubr.msk.f32.gmra.mrb[20].mxu0 %vm408_vm2, %v5272_v56 }
  0x63   : > { %3986 = vmatprep.mubr.msk.f32.mxu1 %vm408_vm2, %v4758_v25  ;;  %4210 = vmatprep.mubr.msk.f32.mxu0 %vm408_vm2, %v5276_v14 }
  0x66   : > { %3987 = vmatmul.mubr.msk.f32.gmra.mrb[6].mxu1 %vm408_vm2, %v4761_v26  ;;  %4211 = vmatmul.mubr.msk.f32.gmra.mrb[22].mxu0 %vm408_vm2, %v5289_v52  ;;  %v5338_v52 = vld [vmem:[%s4715_s29 + $0x190] sm:$0x3] }
  0x67   : > { %3989 = vmatprep.mubr.msk.f32.mxu1 %vm408_vm2, %v4772_v31  ;;  %4213 = vmatprep.mubr.msk.f32.mxu0 %vm408_vm2, %v5293_v27  ;;  %v1936_v27 = vrot.slane %v5320_v6, 2  ;;  %v1938_v57 = vrot.slane %v5338_v52, 2 }
  0x69   : > { %v5353_v35 = vsel %vm994_vm3, %v1935_v62, %v1936_v27  ;;  %v5364_v2 = vsel %vm994_vm3, %v1936_v27, %v1938_v57  ;;  %v5379_v27 = vld [vmem:[%s5968_s1 + $0x20] sm:$0xf] }
  0x6a   : > { %3990 = vmatmul.mubr.msk.f32.gmra.mrb[8].mxu1 %vm408_vm2, %v4775_v32  ;;  %4214 = vmatmul.mubr.msk.f32.gmra.mrb[24].mxu0 %vm408_vm2, %v5306_v36  ;;  %6092 = vst [vmem:[#allocation49_spill] sm:$0xff] %v5353_v35  ;;  %6093 = vst [vmem:[#allocation50_spill] sm:$0xff] %v5364_v2  ;;  %v6099_v57 = vld [vmem:[#allocation30_spill] sm:$0xff] }
  0x6b   : > { %3992 = vmatprep.mubr.msk.f32.mxu1 %vm408_vm2, %v4812_v42  ;;  %4216 = vmatprep.mubr.msk.f32.mxu0 %vm408_vm2, %v5310_v34 }
  0x6e   : > { %3993 = vmatmul.mubr.msk.f32.gmra.mrb[10].mxu1 %vm408_vm2, %v4815_v43  ;;  %4217 = vmatmul.mubr.msk.f32.gmra.mrb[26].mxu0 %vm408_vm2, %v5329_v60 }
  0x6f   : > { %3995 = vmatprep.mubr.msk.f32.mxu1 %vm408_vm2, %v4840_v50  ;;  %4219 = vmatprep.mubr.msk.f32.mxu0 %vm408_vm2, %v5333_v33 }
  0x72   : > { %3996 = vmatmul.mubr.msk.f32.gmra.mrb[12].mxu1 %vm408_vm2, %v4843_v51  ;;  %4220 = vmatmul.mubr.msk.f32.gmra.mrb[28].mxu0 %vm408_vm2, %v5349_v48 }
  0x73   : > { %3998 = vmatprep.mubr.msk.f32.mxu1 %vm408_vm2, %v4866_v58  ;;  %4222 = vmatprep.mubr.msk.f32.mxu0 %vm408_vm2, %v5353_v35  ;;  %v6104_v35 = vld [vmem:[#allocation6_spill] sm:$0xff] }
  0x76   : > { %3999 = vmatmul.mubr.msk.f32.gmra.mrb[14].mxu1 %vm408_vm2, %v4869_v59  ;;  %4223 = vmatmul.mubr.msk.f32.gmra.mrb[30].mxu0 %vm408_vm2, %v5364_v2  ;;  %v6103_v2 = vld [vmem:[#allocation5_spill] sm:$0xff] }
  0x77   : > { %4001 = vmatprep.mubr.msk.f32.mxu1 %vm408_vm2, %v4892_v3  ;;  %4227 = vmatprep.mubr.msk.f32.mxu0 %vm408_vm2, %v4741_v15 }
  0x7a   : > { %4002 = vmatmul.mubr.msk.f32.gmra.mrb[16].mxu1 %vm408_vm2, %v4895_v7  ;;  %4228 = vmatmul.mubr.msk.f32.vlgmr.msra.gmra.mrb[0].mxu0 %vm408_vm2, %v4746_v18 }
  0x7b   : > { %4004 = vmatprep.mubr.msk.f32.mxu1 %vm408_vm2, %v4933_v28  ;;  %4276 = vmatpush3.msk.msra.mxu0 %vm473_vm0, %v5003_v30  ;;  %v995_v30 = vrot.slane %v4718_v4, 2  ;;  %v999_v4 = vsel %vm994_vm3, %v996_v38, %v998_v37  ;;  %v6101_v37 = vld [vmem:[#allocation36_spill] sm:$0xff] }
  0x7c   : > { %4230 = vmatprep.mubr.msk.f32.mxu0 %vm408_vm2, %v4758_v25  ;;  %4325 = vmatprep.subr.msk.mxu0 %vm473_vm0, %v5379_v27 }
  0x7d   : > { %v997_v62 = vsel %vm994_vm3, %v995_v30, %v996_v38  ;;  %v6100_v30 = vld [vmem:[#allocation32_spill] sm:$0xff]  ;;  %v5503_v38 = vld [vmem:[%s4715_s29 + $0x198] sm:$0xff] }
  0x7e   : > { %4005 = vmatmul.mubr.msk.f32.gmra.mrb[18].mxu1 %vm408_vm2, %v4936_v29  ;;  %4231 = vmatmul.mubr.msk.f32.gmra.mrb[2].mxu0 %vm408_vm2, %v4761_v26 }
  0x7f   : > { %4007 = vmatprep.mubr.msk.f32.mxu1 %vm408_vm2, %v4961_v53  ;;  %4233 = vmatprep.mubr.msk.f32.mxu0 %vm408_vm2, %v4772_v31 }
  0x82   : > { %4008 = vmatmul.mubr.msk.f32.gmra.mrb[20].mxu1 %vm408_vm2, %v4964_v55  ;;  %4234 = vmatmul.mubr.msk.f32.gmra.mrb[4].mxu0 %vm408_vm2, %v4775_v32 }
  0x83   : > { %4010 = vmatprep.mubr.msk.f32.mxu1 %vm408_vm2, %v4993_v22  ;;  %4236 = vmatprep.mubr.msk.f32.mxu0 %vm408_vm2, %v4812_v42 }
  0x86   : > { %4011 = vmatmul.mubr.msk.f32.gmra.mrb[22].mxu1 %vm408_vm2, %v4996_v24  ;;  %4237 = vmatmul.mubr.msk.f32.gmra.mrb[6].mxu0 %vm408_vm2, %v4815_v43 }
  0x87   : > { %4013 = vmatprep.mubr.msk.f32.mxu1 %vm408_vm2, %v5035_v8  ;;  %4239 = vmatprep.mubr.msk.f32.mxu0 %vm408_vm2, %v4840_v50 }
  0x8a   : > { %4014 = vmatmul.mubr.msk.f32.gmra.mrb[24].mxu1 %vm408_vm2, %v5038_v10  ;;  %4240 = vmatmul.mubr.msk.f32.gmra.mrb[8].mxu0 %vm408_vm2, %v4843_v51 }
  0x8b   : > { %4016 = vmatprep.mubr.msk.f32.mxu1 %vm408_vm2, %v5072_v46  ;;  %4242 = vmatprep.mubr.msk.f32.mxu0 %vm408_vm2, %v4866_v58 }
  0x8e   : > { %4017 = vmatmul.mubr.msk.f32.gmra.mrb[26].mxu1 %vm408_vm2, %v5075_v12  ;;  %4243 = vmatmul.mubr.msk.f32.gmra.mrb[10].mxu0 %vm408_vm2, %v4869_v59 }
  0x8f   : > { %4019 = vmatprep.mubr.msk.f32.mxu1 %vm408_vm2, %v5107_v20  ;;  %4245 = vmatprep.mubr.msk.f32.mxu0 %vm408_vm2, %v4892_v3 }
  0x92   : > { %4020 = vmatmul.mubr.msk.f32.gmra.mrb[28].mxu1 %vm408_vm2, %v5110_v54  ;;  %4246 = vmatmul.mubr.msk.f32.gmra.mrb[12].mxu0 %vm408_vm2, %v4895_v7 }
  0x93   : > { %4022 = vmatprep.mubr.msk.f32.mxu1 %vm408_vm2, %v5142_v40  ;;  %4248 = vmatprep.mubr.msk.f32.mxu0 %vm408_vm2, %v4933_v28 }
  0x96   : > { %4023 = vmatmul.mubr.msk.f32.gmra.mrb[30].mxu1 %vm408_vm2, %v5145_v44  ;;  %4249 = vmatmul.mubr.msk.f32.gmra.mrb[14].mxu0 %vm408_vm2, %v4936_v29 }
  0x97   : > { %4027 = vmatprep.mubr.msk.f32.mxu1 %vm408_vm2, %v997_v62  ;;  %4251 = vmatprep.mubr.msk.f32.mxu0 %vm408_vm2, %v4961_v53  ;;  %v5514_v62 = vld [vmem:[%s4715_s29 + $0x1a0] sm:$0xff] }
  0x9a   : > { %4028 = vmatmul.mubr.msk.f32.vlgmr.msra.gmra.mrb[0].mxu1 %vm408_vm2, %v999_v4  ;;  %4252 = vmatmul.mubr.msk.f32.gmra.mrb[16].mxu0 %vm408_vm2, %v4964_v55  ;;  %v6102_v4 = vld [vmem:[#allocation4_spill] sm:$0xff] }
  0x9b   : > { %4076 = vmatpush3.msk.msra.mxu1 %vm473_vm0, %v5242_v23  ;;  %4030 = vmatprep.mubr.msk.f32.mxu1 %vm408_vm2, %v4956_v47  ;;  %v6096_v47 = vld [vmem:[#allocation24_spill] sm:$0xff] }
  0x9c   : > { %4254 = vmatprep.mubr.msk.f32.mxu0 %vm408_vm2, %v4993_v22  ;;  %4375 = vmatprep.subr.msk.mxu1 %vm473_vm0, %v4691_v1  ;;  %v6098_v23 = vld [vmem:[#allocation28_spill] sm:$0xff] }
  0x9e   : > { %4031 = vmatmul.mubr.msk.f32.gmra.mrb[2].mxu1 %vm408_vm2, %v4977_v63  ;;  %4255 = vmatmul.mubr.msk.f32.gmra.mrb[18].mxu0 %vm408_vm2, %v4996_v24  ;;  %v6097_v63 = vld [vmem:[#allocation26_spill] sm:$0xff] }
  0x9f   : > { %4033 = vmatprep.mubr.msk.f32.mxu1 %vm408_vm2, %v4988_v21  ;;  %4257 = vmatprep.mubr.msk.f32.mxu0 %vm408_vm2, %v5035_v8 }
  0xa2   : > { %4034 = vmatmul.mubr.msk.f32.gmra.mrb[4].mxu1 %vm408_vm2, %v6094_v5  ;;  %4258 = vmatmul.mubr.msk.f32.gmra.mrb[20].mxu0 %vm408_vm2, %v5038_v10 }
  0xa3   : > { %4036 = vmatprep.mubr.msk.f32.mxu1 %vm408_vm2, %v6095_v11  ;;  %4260 = vmatprep.mubr.msk.f32.mxu0 %vm408_vm2, %v5072_v46 }
  0xa6   : > { %4037 = vmatmul.mubr.msk.f32.gmra.mrb[6].mxu1 %vm408_vm2, %v6096_v47  ;;  %4261 = vmatmul.mubr.msk.f32.gmra.mrb[22].mxu0 %vm408_vm2, %v5075_v12 }
  0xa7   : > { %4039 = vmatprep.mubr.msk.f32.mxu1 %vm408_vm2, %v6097_v63  ;;  %4263 = vmatprep.mubr.msk.f32.mxu0 %vm408_vm2, %v5107_v20 }
  0xaa   : > { %4040 = vmatmul.mubr.msk.f32.gmra.mrb[8].mxu1 %vm408_vm2, %v6098_v23  ;;  %4264 = vmatmul.mubr.msk.f32.gmra.mrb[24].mxu0 %vm408_vm2, %v5110_v54 }
  0xab   : > { %4042 = vmatprep.mubr.msk.f32.mxu1 %vm408_vm2, %v6099_v57  ;;  %4266 = vmatprep.mubr.msk.f32.mxu0 %vm408_vm2, %v5142_v40 }
  0xae   : > { %4043 = vmatmul.mubr.msk.f32.gmra.mrb[10].mxu1 %vm408_vm2, %v6100_v30  ;;  %4267 = vmatmul.mubr.msk.f32.gmra.mrb[26].mxu0 %vm408_vm2, %v5145_v44  ;;  %v6105_v44 = vld [vmem:[#allocation7_spill] sm:$0xff] }
  0xaf   : > { %4045 = vmatprep.mubr.msk.f32.mxu1 %vm408_vm2, %v5137_v19  ;;  %4269 = vmatprep.mubr.msk.f32.mxu0 %vm408_vm2, %v5317_v9 }
  0xb2   : > { %4046 = vmatmul.mubr.msk.f32.gmra.mrb[12].mxu1 %vm408_vm2, %v6101_v37  ;;  %4270 = vmatmul.mubr.msk.f32.gmra.mrb[28].mxu0 %vm408_vm2, %v5320_v6 }
  0xb3   : > { %4048 = vmatprep.mubr.msk.f32.mxu1 %vm408_vm2, %v5172_v39  ;;  %4272 = vmatprep.mubr.msk.f32.mxu0 %vm408_vm2, %v5503_v38 }
  0xb6   : > { %4049 = vmatmul.mubr.msk.f32.gmra.mrb[14].mxu1 %vm408_vm2, %v5189_v41  ;;  %4273 = vmatmul.mubr.msk.f32.gmra.mrb[30].mxu0 %vm408_vm2, %v5514_v62 }
  0xb7   : > { %4051 = vmatprep.mubr.msk.f32.mxu1 %vm408_vm2, %v5196_v13  ;;  %4277 = vmatprep.mubr.msk.f32.mxu0 %vm408_vm2, %v6102_v4  ;;  %v6106_v4 = vld [vmem:[#allocation8_spill] sm:$0xff] }
  0xba   : > { %4052 = vmatmul.mubr.msk.f32.gmra.mrb[16].mxu1 %vm408_vm2, %v5212_v17  ;;  %4278 = vmatmul.mubr.msk.f32.vlgmr.msra.gmra.mrb[0].mxu0 %vm408_vm2, %v6103_v2  ;;  %v6107_v2 = vld [vmem:[#allocation9_spill] sm:$0xff] }
  0xbb   : > { %4054 = vmatprep.mubr.msk.f32.mxu1 %vm408_vm2, %v5216_v61  ;;  %4326 = vmatpush3.msk.msra.mxu0 %vm473_vm0, %v5379_v27  ;;  %v6110_v27 = vld [vmem:[#allocation12_spill] sm:$0xff] }
  0xbc   : > { %4280 = vmatprep.mubr.msk.f32.mxu0 %vm408_vm2, %v6104_v35  ;;  %v6108_v35 = vld [vmem:[#allocation10_spill] sm:$0xff] }
  0xbe   : > { %4055 = vmatmul.mubr.msk.f32.gmra.mrb[18].mxu1 %vm408_vm2, %v5229_v45  ;;  %4281 = vmatmul.mubr.msk.f32.gmra.mrb[2].mxu0 %vm408_vm2, %v6105_v44  ;;  %v6109_v44 = vld [vmem:[#allocation11_spill] sm:$0xff] }
  0xbf   : > { %4057 = vmatprep.mubr.msk.f32.mxu1 %vm408_vm2, %v5233_v0  ;;  %4283 = vmatprep.mubr.msk.f32.mxu0 %vm408_vm2, %v6106_v4  ;;  %v6111_v4 = vld [vmem:[#allocation42_spill] sm:$0xff] }
  0xc2   : > { %4058 = vmatmul.mubr.msk.f32.gmra.mrb[20].mxu1 %vm408_vm2, %v5253_v16  ;;  %4284 = vmatmul.mubr.msk.f32.gmra.mrb[4].mxu0 %vm408_vm2, %v6107_v2  ;;  %v6112_v2 = vld [vmem:[#allocation13_spill] sm:$0xff] }
  0xc3   : > { %4060 = vmatprep.mubr.msk.f32.mxu1 %vm408_vm2, %v5257_v49  ;;  %4286 = vmatprep.mubr.msk.f32.mxu0 %vm408_vm2, %v6108_v35  ;;  %v6113_v49 = vld [vmem:[#allocation43_spill] sm:$0xff]  ;;  %v6114_v35 = vld [vmem:[#allocation14_spill] sm:$0xff] }
  0xc6   : > { %4061 = vmatmul.mubr.msk.f32.gmra.mrb[22].mxu1 %vm408_vm2, %v5272_v56  ;;  %4287 = vmatmul.mubr.msk.f32.gmra.mrb[6].mxu0 %vm408_vm2, %v6109_v44  ;;  %v6115_v44 = vld [vmem:[#allocation15_spill] sm:$0xff] }
  0xc7   : > { %4063 = vmatprep.mubr.msk.f32.mxu1 %vm408_vm2, %v5276_v14  ;;  %4289 = vmatprep.mubr.msk.f32.mxu0 %vm408_vm2, %v6110_v27  ;;  %v6116_v27 = vld [vmem:[#allocation16_spill] sm:$0xff] }
  0xca   : > { %4064 = vmatmul.mubr.msk.f32.gmra.mrb[24].mxu1 %vm408_vm2, %v6111_v4  ;;  %4290 = vmatmul.mubr.msk.f32.gmra.mrb[8].mxu0 %vm408_vm2, %v6112_v2  ;;  %v6117_v2 = vld [vmem:[#allocation17_spill] sm:$0xff] }
  0xcb   : > { %4066 = vmatprep.mubr.msk.f32.mxu1 %vm408_vm2, %v6113_v49  ;;  %4292 = vmatprep.mubr.msk.f32.mxu0 %vm408_vm2, %v6114_v35  ;;  %v6118_v35 = vld [vmem:[#allocation18_spill] sm:$0xff] }
  0xce   : > { %4067 = vmatmul.mubr.msk.f32.gmra.mrb[26].mxu1 %vm408_vm2, %v5306_v36  ;;  %4293 = vmatmul.mubr.msk.f32.gmra.mrb[10].mxu0 %vm408_vm2, %v6115_v44  ;;  %v6119_v44 = vld [vmem:[#allocation19_spill] sm:$0xff] }
  0xcf   : > { %4069 = vmatprep.mubr.msk.f32.mxu1 %vm408_vm2, %v5310_v34  ;;  %4295 = vmatprep.mubr.msk.f32.mxu0 %vm408_vm2, %v6116_v27  ;;  %v6120_v34 = vld [vmem:[#allocation2_spill] sm:$0xff]  ;;  %v6121_v27 = vld [vmem:[#allocation21_spill] sm:$0xff]  ;;  %v5641_v36 = vld [vmem:[%s4715_s29 + $0x1a8] sm:$0x3] }
  0xd2   : > { %4070 = vmatmul.mubr.msk.f32.gmra.mrb[28].mxu1 %vm408_vm2, %v5329_v60  ;;  %4296 = vmatmul.mubr.msk.f32.gmra.mrb[12].mxu0 %vm408_vm2, %v6117_v2  ;;  %v6122_v60 = vld [vmem:[#allocation3_spill] sm:$0xff] }
  0xd3   : > { %4072 = vmatprep.mubr.msk.f32.mxu1 %vm408_vm2, %v5333_v33  ;;  %4298 = vmatprep.mubr.msk.f32.mxu0 %vm408_vm2, %v6118_v35  ;;  %v6123_v2 = vld [vmem:[#allocation23_spill] sm:$0xff]  ;;  %v6131_v33 = vld [vmem:[#allocation38_spill] sm:$0xff] }
  0xd6   : > { %4073 = vmatmul.mubr.msk.f32.gmra.mrb[30].mxu1 %vm408_vm2, %v5349_v48  ;;  %4299 = vmatmul.mubr.msk.f32.gmra.mrb[14].mxu0 %vm408_vm2, %v6119_v44  ;;  %v6124_v48 = vld [vmem:[#allocation25_spill] sm:$0xff] }
  0xd7   : > { %4077 = vmatprep.mubr.msk.f32.mxu1 %vm408_vm2, %v6120_v34  ;;  %4301 = vmatprep.mubr.msk.f32.mxu0 %vm408_vm2, %v6121_v27  ;;  %v6125_v34 = vld [vmem:[#allocation27_spill] sm:$0xff] }
  0xda   : > { %4078 = vmatmul.mubr.msk.f32.vlgmr.msra.gmra.mrb[0].mxu1 %vm408_vm2, %v6122_v60  ;;  %4302 = vmatmul.mubr.msk.f32.gmra.mrb[16].mxu0 %vm408_vm2, %v6123_v2  ;;  %v6126_v60 = vld [vmem:[#allocation29_spill] sm:$0xff] }
  0xdb   : > { %4376 = vmatpush3.msk.msra.mxu1 %vm473_vm0, %v4691_v1  ;;  %4080 = vmatprep.mubr.msk.f32.mxu1 %vm408_vm2, %v4741_v15  ;;  %v6127_v1 = vld [vmem:[#allocation31_spill] sm:$0xff]  ;;  %v6128_v15 = vld [vmem:[#allocation33_spill] sm:$0xff] }
  0xdc   : > { %4304 = vmatprep.mubr.msk.f32.mxu0 %vm408_vm2, %v6124_v48 }
  0xde   : > { %4081 = vmatmul.mubr.msk.f32.gmra.mrb[2].mxu1 %vm408_vm2, %v4746_v18  ;;  %4305 = vmatmul.mubr.msk.f32.gmra.mrb[18].mxu0 %vm408_vm2, %v6125_v34  ;;  %v6129_v18 = vld [vmem:[#allocation35_spill] sm:$0xff] }
  0xdf   : > { %4083 = vmatprep.mubr.msk.f32.mxu1 %vm408_vm2, %v4758_v25  ;;  %4307 = vmatprep.mubr.msk.f32.mxu0 %vm408_vm2, %v6126_v60  ;;  %v6130_v25 = vld [vmem:[#allocation37_spill] sm:$0xff] }
  0xe2   : > { %4084 = vmatmul.mubr.msk.f32.gmra.mrb[4].mxu1 %vm408_vm2, %v4761_v26  ;;  %4308 = vmatmul.mubr.msk.f32.gmra.mrb[20].mxu0 %vm408_vm2, %v6127_v1  ;;  %v1666_v26 = vrot.slane %v5317_v9, 1 }
  0xe3   : > { %4086 = vmatprep.mubr.msk.f32.mxu1 %vm408_vm2, %v4772_v31  ;;  %4310 = vmatprep.mubr.msk.f32.mxu0 %vm408_vm2, %v6128_v15  ;;  %v1667_v31 = vrot.slane %v5320_v6, 1 }
  0xe5   : > { %v5638_v15 = vsel %vm327_vm1, %v1666_v26, %v1667_v31 }
  0xe6   : > { %4087 = vmatmul.mubr.msk.f32.gmra.mrb[6].mxu1 %vm408_vm2, %v4775_v32  ;;  %4311 = vmatmul.mubr.msk.f32.gmra.mrb[22].mxu0 %vm408_vm2, %v6129_v18  ;;  %v6132_v32 = vld [vmem:[#allocation39_spill] sm:$0xff]  ;;  %v2472_v18 = vrot.slane %v5514_v62, 1 }
  0xe7   : > { %4089 = vmatprep.mubr.msk.f32.mxu1 %vm408_vm2, %v4812_v42  ;;  %4313 = vmatprep.mubr.msk.f32.mxu0 %vm408_vm2, %v6130_v25  ;;  %v1669_v42 = vrot.slane %v5338_v52, 1  ;;  %v2471_v25 = vrot.slane %v5503_v38, 1  ;;  %v2474_v52 = vrot.slane %v5641_v36, 1 }
  0xe9   : > { %v2473_v26 = vsel %vm327_vm1, %v2471_v25, %v2472_v18 }
  0xea   : > { %4090 = vmatmul.mubr.msk.f32.gmra.mrb[8].mxu1 %vm408_vm2, %v4815_v43  ;;  %4314 = vmatmul.mubr.msk.f32.gmra.mrb[24].mxu0 %vm408_vm2, %v6131_v33  ;;  %v6133_v43 = vld [vmem:[#allocation40_spill] sm:$0xff] }
  0xeb   : > { %4092 = vmatprep.mubr.msk.f32.mxu1 %vm408_vm2, %v4840_v50  ;;  %4316 = vmatprep.mubr.msk.f32.mxu0 %vm408_vm2, %v6132_v32  ;;  %v5652_v50 = vsel %vm327_vm1, %v1667_v31, %v1669_v42 }
  0xee   : > { %4093 = vmatmul.mubr.msk.f32.gmra.mrb[10].mxu1 %vm408_vm2, %v4843_v51  ;;  %4317 = vmatmul.mubr.msk.f32.gmra.mrb[26].mxu0 %vm408_vm2, %v6133_v43  ;;  %v2475_v51 = vsel %vm327_vm1, %v2472_v18, %v2474_v52 }
  0xef   : > { %4095 = vmatprep.mubr.msk.f32.mxu1 %vm408_vm2, %v4866_v58  ;;  %4319 = vmatprep.mubr.msk.f32.mxu0 %vm408_vm2, %v5638_v15  ;;  %v6137_v58 = vld [vmem:[#allocation33_spill] sm:$0xff] }
  0xf2   : > { %4096 = vmatmul.mubr.msk.f32.gmra.mrb[12].mxu1 %vm408_vm2, %v4869_v59  ;;  %4320 = vmatmul.mubr.msk.f32.gmra.mrb[28].mxu0 %vm408_vm2, %v5652_v50  ;;  %v6138_v59 = vld [vmem:[#allocation45_spill] sm:$0xff] }
  0xf3   : > { %4098 = vmatprep.mubr.msk.f32.mxu1 %vm408_vm2, %v4892_v3  ;;  %4322 = vmatprep.mubr.msk.f32.mxu0 %vm408_vm2, %v2473_v26  ;;  %v6139_v3 = vld [vmem:[#allocation35_spill] sm:$0xff] }
  0xf6   : > { %4099 = vmatmul.mubr.msk.f32.gmra.mrb[14].mxu1 %vm408_vm2, %v4895_v7  ;;  %4323 = vmatmul.mubr.msk.f32.gmra.mrb[30].mxu0 %vm408_vm2, %v2475_v51  ;;  %v6140_v7 = vld [vmem:[#allocation46_spill] sm:$0xff] }
  0xf7   : > { %4101 = vmatprep.mubr.msk.f32.mxu1 %vm408_vm2, %v4933_v28  ;;  %4327 = vmatprep.mubr.msk.f32.mxu0 %vm408_vm2, %v4988_v21  ;;  %v2740_v28 = vrot.slane %v5503_v38, 2  ;;  %v2743_v21 = vrot.slane %v5641_v36, 2 }
  0xfa   : > { %4102 = vmatmul.mubr.msk.f32.gmra.mrb[16].mxu1 %vm408_vm2, %v4936_v29  ;;  %4328 = vmatmul.mubr.msk.f32.vlgmr.msra.gmra.mrb[0].mxu0 %vm408_vm2, %v6094_v5  ;;  %v2741_v29 = vrot.slane %v5514_v62, 2 }
  0xfb   : > { %4104 = vmatprep.mubr.msk.f32.mxu1 %vm408_vm2, %v4961_v53  ;;  %4330 = vmatprep.mubr.msk.f32.mxu0 %vm408_vm2, %v6095_v11  ;;  %v6143_v53 = vld [vmem:[#allocation48_spill] sm:$0xff] }
  0xfe   : > { %4105 = vmatmul.mubr.msk.f32.gmra.mrb[18].mxu1 %vm408_vm2, %v4964_v55  ;;  %4331 = vmatmul.mubr.msk.f32.gmra.mrb[2].mxu0 %vm408_vm2, %v6096_v47  ;;  %v6144_v55 = vld [vmem:[#allocation49_spill] sm:$0xff] }
  0xff   : > { %4107 = vmatprep.mubr.msk.f32.mxu1 %vm408_vm2, %v4993_v22  ;;  %4333 = vmatprep.mubr.msk.f32.mxu0 %vm408_vm2, %v6097_v63  ;;  %v6142_v22 = vld [vmem:[#allocation47_spill] sm:$0xff] }
 0x102   : > { %4108 = vmatmul.mubr.msk.f32.gmra.mrb[20].mxu1 %vm408_vm2, %v4996_v24  ;;  %4334 = vmatmul.mubr.msk.f32.gmra.mrb[4].mxu0 %vm408_vm2, %v6098_v23  ;;  %v2742_v24 = vsel %vm994_vm3, %v2740_v28, %v2741_v29 }
 0x103   : > { %4110 = vmatprep.mubr.msk.f32.mxu1 %vm408_vm2, %v5035_v8  ;;  %4336 = vmatprep.mubr.msk.f32.mxu0 %vm408_vm2, %v6099_v57  ;;  %v6141_v8 = vld [vmem:[#allocation37_spill] sm:$0xff] }
 0x106   : > { %4111 = vmatmul.mubr.msk.f32.gmra.mrb[22].mxu1 %vm408_vm2, %v5038_v10  ;;  %4337 = vmatmul.mubr.msk.f32.gmra.mrb[6].mxu0 %vm408_vm2, %v6100_v30  ;;  %v6145_v10 = vld [vmem:[#allocation50_spill] sm:$0xff] }
 0x107   : > { %4113 = vmatprep.mubr.msk.f32.mxu1 %vm408_vm2, %v5072_v46  ;;  %4339 = vmatprep.mubr.msk.f32.mxu0 %vm408_vm2, %v5137_v19  ;;  %v6134_v46 = vld [vmem:[#allocation34_spill] sm:$0xff] }
 0x10a   : > { %4114 = vmatmul.mubr.msk.f32.gmra.mrb[24].mxu1 %vm408_vm2, %v5075_v12  ;;  %4340 = vmatmul.mubr.msk.f32.gmra.mrb[8].mxu0 %vm408_vm2, %v6101_v37  ;;  %v2744_v12 = vsel %vm994_vm3, %v2741_v29, %v2743_v21 }
 0x10b   : > { %4116 = vmatprep.mubr.msk.f32.mxu1 %vm408_vm2, %v5107_v20  ;;  %4342 = vmatprep.mubr.msk.f32.mxu0 %vm408_vm2, %v5172_v39 }
 0x10e   : > { %4117 = vmatmul.mubr.msk.f32.gmra.mrb[26].mxu1 %vm408_vm2, %v5110_v54  ;;  %4343 = vmatmul.mubr.msk.f32.gmra.mrb[10].mxu0 %vm408_vm2, %v5189_v41 }
 0x10f   : > { %4119 = vmatprep.mubr.msk.f32.mxu1 %vm408_vm2, %v5142_v40  ;;  %4345 = vmatprep.mubr.msk.f32.mxu0 %vm408_vm2, %v5196_v13 }
 0x112   : > { %4120 = vmatmul.mubr.msk.f32.gmra.mrb[28].mxu1 %vm408_vm2, %v6134_v46  ;;  %4346 = vmatmul.mubr.msk.f32.gmra.mrb[12].mxu0 %vm408_vm2, %v5212_v17 }
 0x113   : > { %4122 = vmatprep.mubr.msk.f32.mxu1 %vm408_vm2, %v5317_v9  ;;  %4348 = vmatprep.mubr.msk.f32.mxu0 %vm408_vm2, %v5216_v61  ;;  %v6135_v9 = vld [vmem:[#allocation41_spill] sm:$0xff] }
 0x116   : > { %4123 = vmatmul.mubr.msk.f32.gmra.mrb[30].mxu1 %vm408_vm2, %v5320_v6  ;;  %4349 = vmatmul.mubr.msk.f32.gmra.mrb[14].mxu0 %vm408_vm2, %v5229_v45  ;;  %v6136_v6 = vld [vmem:[#allocation44_spill] sm:$0xff] }
 0x117   : > { %4151 = vmatprep.mubr.msk.f32.mxu1 %vm408_vm2, %v6118_v35  ;;  %4351 = vmatprep.mubr.msk.f32.mxu0 %vm408_vm2, %v5233_v0 }
 0x11a   : > { %4152 = vmatmul.mubr.msk.f32.vlgmr.msra.gmra.mrb[16].mxu1 %vm408_vm2, %v6119_v44  ;;  %4352 = vmatmul.mubr.msk.f32.gmra.mrb[16].mxu0 %vm408_vm2, %v5253_v16 }
 0x11b   : > { %4154 = vmatprep.mubr.msk.f32.mxu1 %vm408_vm2, %v6121_v27  ;;  %4354 = vmatprep.mubr.msk.f32.mxu0 %vm408_vm2, %v6135_v9 }
 0x11e   : > { %4155 = vmatmul.mubr.msk.f32.gmra.mrb[18].mxu1 %vm408_vm2, %v6123_v2  ;;  %4355 = vmatmul.mubr.msk.f32.gmra.mrb[18].mxu0 %vm408_vm2, %v5272_v56 }
 0x11f   : > { %4157 = vmatprep.mubr.msk.f32.mxu1 %vm408_vm2, %v6124_v48  ;;  %4357 = vmatprep.mubr.msk.f32.mxu0 %vm408_vm2, %v5276_v14 }
 0x122   : > { %4158 = vmatmul.mubr.msk.f32.gmra.mrb[20].mxu1 %vm408_vm2, %v6125_v34  ;;  %4358 = vmatmul.mubr.msk.f32.gmra.mrb[20].mxu0 %vm408_vm2, %v6111_v4 }
 0x123   : > { %4160 = vmatprep.mubr.msk.f32.mxu1 %vm408_vm2, %v6126_v60  ;;  %4360 = vmatprep.mubr.msk.f32.mxu0 %vm408_vm2, %v6113_v49 }
 0x126   : > { %4161 = vmatmul.mubr.msk.f32.gmra.mrb[22].mxu1 %vm408_vm2, %v6127_v1  ;;  %4361 = vmatmul.mubr.msk.f32.gmra.mrb[22].mxu0 %vm408_vm2, %v6136_v6 }
 0x127   : > { %4163 = vmatprep.mubr.msk.f32.mxu1 %vm408_vm2, %v6137_v58  ;;  %4363 = vmatprep.mubr.msk.f32.mxu0 %vm408_vm2, %v6138_v59 }
 0x12a   : > { %4164 = vmatmul.mubr.msk.f32.gmra.mrb[24].mxu1 %vm408_vm2, %v6139_v3  ;;  %4364 = vmatmul.mubr.msk.f32.gmra.mrb[24].mxu0 %vm408_vm2, %v6140_v7 }
 0x12b   : > { %4166 = vmatprep.mubr.msk.f32.mxu1 %vm408_vm2, %v6141_v8  ;;  %4366 = vmatprep.mubr.msk.f32.mxu0 %vm408_vm2, %v6142_v22 }
 0x12e   : > { %4167 = vmatmul.mubr.msk.f32.gmra.mrb[26].mxu1 %vm408_vm2, %v6131_v33  ;;  %4367 = vmatmul.mubr.msk.f32.gmra.mrb[26].mxu0 %vm408_vm2, %v6143_v53 }
 0x12f   : > { %4169 = vmatprep.mubr.msk.f32.mxu1 %vm408_vm2, %v6132_v32  ;;  %4369 = vmatprep.mubr.msk.f32.mxu0 %vm408_vm2, %v6144_v55 }
 0x132   : > { %4170 = vmatmul.mubr.msk.f32.gmra.mrb[28].mxu1 %vm408_vm2, %v6133_v43  ;;  %4370 = vmatmul.mubr.msk.f32.gmra.mrb[28].mxu0 %vm408_vm2, %v6145_v10 }
 0x133   : > { %4172 = vmatprep.mubr.msk.f32.mxu1 %vm408_vm2, %v5638_v15  ;;  %4372 = vmatprep.mubr.msk.f32.mxu0 %vm408_vm2, %v2742_v24 }
 0x136   : > { %4173 = vmatmul.mubr.msk.f32.gmra.mrb[30].mxu1 %vm408_vm2, %v5652_v50  ;;  %4373 = vmatmul.mubr.msk.f32.gmra.mrb[30].mxu0 %vm408_vm2, %v2744_v12 }
 0x1ad   : > { %v4079_v40 = vpop.f32.mrb[0].mxu1 }
 0x1ae   : > { %v1474_v20 = vpop.f32.mrb[1].mxu1 }
 0x1b1   : > { %v4082_v54 = vpop.f32.mrb[2].mxu1 }
 0x1b2   : > { %v1484_v19 = vpop.f32.mrb[3].mxu1 }
 0x1b5   : > { %v4085_v13 = vpop.f32.mrb[4].mxu1 }
 0x1b6   : > { %v1494_v39 = vpop.f32.mrb[5].mxu1 }
 0x1b9   : > { %v4088_v41 = vpop.f32.mrb[6].mxu1 }
 0x1ba   : > { %v1504_v17 = vpop.f32.mrb[7].mxu1 }
 0x1bd   : > { %v5798_v61 = vpop.f32.mrb[8].mxu1 }
 0x1be   : > { %v5800_v45 = vpop.f32.mrb[9].mxu1 }
 0x1c1   : > { %v5803_v0 = vpop.f32.mrb[10].mxu1 }
 0x1c2   : > { %v5805_v16 = vpop.f32.mrb[11].mxu1 }
 0x1c5   : > { %v5807_v49 = vpop.f32.mrb[12].mxu1 }
 0x1c6   : > { %v5809_v56 = vpop.f32.mrb[13].mxu1 }
 0x1c9   : > { %v5811_v14 = vpop.f32.mrb[14].mxu1 }
 0x1ca   : > { %v5813_v36 = vpop.f32.mrb[15].mxu1 }
 0x1cd   : > { %v4329_v33 = vpop.f32.mrb[0].mxu0 }
 0x1ce   : > { %v4377_v48 = vadd.f32 %v4329_v33, %v4079_v40  ;;  %v2818_v5 = vpop.f32.mrb[1].mxu0 }
 0x1cf   : > { %v4378_v11 = vadd.f32 %v2818_v5, %v1474_v20 }
 0x1d0   : > { %3011 = vst.msk [vmem:[%s5818_s20 + $0x8] sm:$0xff] %vm3009_vm4, %v4377_v48  ;;  %v3043_v47 = vsel %vm3009_vm4, %v4377_v48, 0.0  ;;  %v3114_v63 = vmul.f32 %v4377_v48, %v4377_v48 }
 0x1d1   : > { %3010 = vst.msk [vmem:[%s5818_s20] sm:$0xff] %vm3009_vm4, %v4378_v11  ;;  %v3042_v23 = vsel %vm3009_vm4, %v4378_v11, 0.0  ;;  %v3113_v57 = vmul.f32 %v4378_v11, %v4378_v11  ;;  %v4332_v30 = vpop.f32.mrb[2].mxu0 }
 0x1d2   : > { %v3146_v38 = vsel %vm3009_vm4, %v3114_v63, 0.0  ;;  %v3044_v37 = vadd.f32 %v3043_v47, %v3042_v23  ;;  %v4379_v62 = vadd.f32 %v4332_v30, %v4082_v54  ;;  %v2828_v4 = vpop.f32.mrb[3].mxu0 }
 0x1d3   : > { %v3145_v35 = vsel %vm3009_vm4, %v3113_v57, 0.0  ;;  %v4380_v44 = vadd.f32 %v2828_v4, %v1484_v19 }
 0x1d4   : > { %v3147_v27 = vadd.f32 %v3146_v38, %v3145_v35  ;;  %3013 = vst.msk [vmem:[%s5818_s20 + $0x18] sm:$0xff] %vm3009_vm4, %v4379_v62  ;;  %v3116_v2 = vmul.f32 %v4379_v62, %v4379_v62  ;;  %v3047_v31 = vsel %vm3009_vm4, %v4379_v62, 0.0 }
 0x1d5   : > { %3012 = vst.msk [vmem:[%s5818_s20 + $0x10] sm:$0xff] %vm3009_vm4, %v4380_v44  ;;  %v3045_v34 = vsel %vm3009_vm4, %v4380_v44, 0.0  ;;  %v3115_v60 = vmul.f32 %v4380_v44, %v4380_v44  ;;  %v4335_v1 = vpop.f32.mrb[4].mxu0 }
 0x1d6   : > { %v3046_v15 = vadd.f32 %v3045_v34, %v3044_v37  ;;  %v4381_v18 = vadd.f32 %v4335_v1, %v4085_v13  ;;  %v2838_v25 = vpop.f32.mrb[5].mxu0  ;;  %v3150_v52 = vsel %vm3009_vm4, %v3116_v2, 0.0 }
 0x1d7   : > { %v3148_v32 = vsel %vm3009_vm4, %v3115_v60, 0.0  ;;  %v4382_v42 = vadd.f32 %v2838_v25, %v1494_v39 }
 0x1d8   : > { %v3149_v43 = vadd.f32 %v3148_v32, %v3147_v27  ;;  %3015 = vst.msk [vmem:[%s5818_s20 + $0x28] sm:$0xff] %vm3009_vm4, %v4381_v18  ;;  %v3048_v50 = vadd.f32 %v3047_v31, %v3046_v15  ;;  %v3118_v26 = vmul.f32 %v4381_v18, %v4381_v18  ;;  %v3051_v7 = vsel %vm3009_vm4, %v4381_v18, 0.0 }
 0x1d9   : > { %3014 = vst.msk [vmem:[%s5818_s20 + $0x20] sm:$0xff] %vm3009_vm4, %v4382_v42  ;;  %v3049_v51 = vsel %vm3009_vm4, %v4382_v42, 0.0  ;;  %v3117_v46 = vmul.f32 %v4382_v42, %v4382_v42  ;;  %v4338_v9 = vpop.f32.mrb[6].mxu0 }
 0x1da   : > { %v3050_v6 = vadd.f32 %v3049_v51, %v3048_v50  ;;  %v3151_v58 = vadd.f32 %v3150_v52, %v3149_v43  ;;  %v4383_v59 = vadd.f32 %v4338_v9, %v4088_v41  ;;  %v2848_v3 = vpop.f32.mrb[7].mxu0  ;;  %v3154_v53 = vsel %vm3009_vm4, %v3118_v26, 0.0 }
 0x1db   : > { %v3152_v8 = vsel %vm3009_vm4, %v3117_v46, 0.0  ;;  %v4384_v22 = vadd.f32 %v2848_v3, %v1504_v17 }
 0x1dc   : > { %v3153_v28 = vadd.f32 %v3152_v8, %v3151_v58  ;;  %3017 = vst.msk [vmem:[%s5818_s20 + $0x38] sm:$0xff] %vm3009_vm4, %v4383_v59  ;;  %v3052_v29 = vadd.f32 %v3051_v7, %v3050_v6  ;;  %v3120_v55 = vmul.f32 %v4383_v59, %v4383_v59  ;;  %v3055_v19 = vsel %vm3009_vm4, %v4383_v59, 0.0 }
 0x1dd   : > { %3016 = vst.msk [vmem:[%s5818_s20 + $0x30] sm:$0xff] %vm3009_vm4, %v4384_v22  ;;  %v3053_v21 = vsel %vm3009_vm4, %v4384_v22, 0.0  ;;  %v3119_v24 = vmul.f32 %v4384_v22, %v4384_v22  ;;  %v4341_v10 = vpop.f32.mrb[8].mxu0 }
 0x1de   : > { %v3054_v12 = vadd.f32 %v3053_v21, %v3052_v29  ;;  %v3155_v40 = vadd.f32 %v3154_v53, %v3153_v28  ;;  %v4385_v20 = vadd.f32 %v4341_v10, %v5798_v61  ;;  %v2858_v54 = vpop.f32.mrb[9].mxu0  ;;  %v3158_v33 = vsel %vm3009_vm4, %v3120_v55, 0.0 }
 0x1df   : > { %v3156_v13 = vsel %vm3009_vm4, %v3119_v24, 0.0  ;;  %v4386_v39 = vadd.f32 %v2858_v54, %v5800_v45 }
 0x1e0   : > { %v3157_v41 = vadd.f32 %v3156_v13, %v3155_v40  ;;  %3019 = vst.msk [vmem:[%s5818_s20 + $0x48] sm:$0xff] %vm3009_vm4, %v4385_v20  ;;  %v3056_v17 = vadd.f32 %v3055_v19, %v3054_v12  ;;  %v3122_v48 = vmul.f32 %v4385_v20, %v4385_v20  ;;  %v3059_v57 = vsel %vm3009_vm4, %v4385_v20, 0.0 }
 0x1e1   : > { %3018 = vst.msk [vmem:[%s5818_s20 + $0x40] sm:$0xff] %vm3009_vm4, %v4386_v39  ;;  %v3057_v61 = vsel %vm3009_vm4, %v4386_v39, 0.0  ;;  %v3121_v5 = vmul.f32 %v4386_v39, %v4386_v39  ;;  %v4344_v11 = vpop.f32.mrb[10].mxu0 }
 0x1e2   : > { %v3058_v47 = vadd.f32 %v3057_v61, %v3056_v17  ;;  %v3159_v63 = vadd.f32 %v3158_v33, %v3157_v41  ;;  %v4387_v23 = vadd.f32 %v4344_v11, %v5803_v0  ;;  %v2868_v45 = vpop.f32.mrb[11].mxu0  ;;  %v3162_v4 = vsel %vm3009_vm4, %v3122_v48, 0.0 }
 0x1e3   : > { %v3160_v30 = vsel %vm3009_vm4, %v3121_v5, 0.0  ;;  %v4388_v38 = vadd.f32 %v2868_v45, %v5805_v16 }
 0x1e4   : > { %v3161_v37 = vadd.f32 %v3160_v30, %v3159_v63  ;;  %3021 = vst.msk [vmem:[%s5818_s20 + $0x58] sm:$0xff] %vm3009_vm4, %v4387_v23  ;;  %v3060_v62 = vadd.f32 %v3059_v57, %v3058_v47  ;;  %v3124_v35 = vmul.f32 %v4387_v23, %v4387_v23  ;;  %v3063_v1 = vsel %vm3009_vm4, %v4387_v23, 0.0 }
 0x1e5   : > { %3020 = vst.msk [vmem:[%s5818_s20 + $0x50] sm:$0xff] %vm3009_vm4, %v4388_v38  ;;  %v3061_v0 = vsel %vm3009_vm4, %v4388_v38, 0.0  ;;  %v3123_v44 = vmul.f32 %v4388_v38, %v4388_v38  ;;  %v4347_v27 = vpop.f32.mrb[12].mxu0 }
 0x1e6   : > { %v3062_v2 = vadd.f32 %v3061_v0, %v3060_v62  ;;  %v3163_v34 = vadd.f32 %v3162_v4, %v3161_v37  ;;  %v4389_v60 = vadd.f32 %v4347_v27, %v5807_v49  ;;  %v2878_v16 = vpop.f32.mrb[13].mxu0  ;;  %v3166_v32 = vsel %vm3009_vm4, %v3124_v35, 0.0 }
 0x1e7   : > { %v3164_v15 = vsel %vm3009_vm4, %v3123_v44, 0.0  ;;  %v4390_v18 = vadd.f32 %v2878_v16, %v5809_v56 }
 0x1e8   : > { %v3165_v25 = vadd.f32 %v3164_v15, %v3163_v34  ;;  %3023 = vst.msk [vmem:[%s5818_s20 + $0x68] sm:$0xff] %vm3009_vm4, %v4389_v60  ;;  %v3064_v31 = vadd.f32 %v3063_v1, %v3062_v2  ;;  %v3126_v42 = vmul.f32 %v4389_v60, %v4389_v60  ;;  %v3067_v46 = vsel %vm3009_vm4, %v4389_v60, 0.0 }
 0x1e9   : > { %3022 = vst.msk [vmem:[%s5818_s20 + $0x60] sm:$0xff] %vm3009_vm4, %v4390_v18  ;;  %v3065_v43 = vsel %vm3009_vm4, %v4390_v18, 0.0  ;;  %v3125_v49 = vmul.f32 %v4390_v18, %v4390_v18  ;;  %v4350_v50 = vpop.f32.mrb[14].mxu0 }
 0x1ea   : > { %v3066_v52 = vadd.f32 %v3065_v43, %v3064_v31  ;;  %v3167_v26 = vadd.f32 %v3166_v32, %v3165_v25  ;;  %v4391_v51 = vadd.f32 %v4350_v50, %v5811_v14  ;;  %v2888_v56 = vpop.f32.mrb[15].mxu0  ;;  %v3170_v7 = vsel %vm3009_vm4, %v3126_v42, 0.0 }
 0x1eb   : > { %v3168_v9 = vsel %vm3009_vm4, %v3125_v49, 0.0  ;;  %v4392_v6 = vadd.f32 %v2888_v56, %v5813_v36 }
 0x1ec   : > { %v3169_v58 = vadd.f32 %v3168_v9, %v3167_v26  ;;  %3025 = vst.msk [vmem:[%s5818_s20 + $0x78] sm:$0xff] %vm3009_vm4, %v4391_v51  ;;  %v3068_v59 = vadd.f32 %v3067_v46, %v3066_v52  ;;  %v3128_v8 = vmul.f32 %v4391_v51, %v4391_v51  ;;  %v3071_v24 = vsel %vm3009_vm4, %v4391_v51, 0.0 }
 0x1ed   : > { %v4153_v3 = vpop.f32.mrb[16].mxu1  ;;  %3024 = vst.msk [vmem:[%s5818_s20 + $0x70] sm:$0xff] %vm3009_vm4, %v4392_v6  ;;  %v3069_v14 = vsel %vm3009_vm4, %v4392_v6, 0.0  ;;  %v3127_v22 = vmul.f32 %v4392_v6, %v4392_v6  ;;  %v4353_v28 = vpop.f32.mrb[16].mxu0 }
 0x1ee   : > { %v1824_v29 = vpop.f32.mrb[17].mxu1  ;;  %v3070_v53 = vadd.f32 %v3069_v14, %v3068_v59  ;;  %v3171_v55 = vadd.f32 %v3170_v7, %v3169_v58  ;;  %v4393_v36 = vadd.f32 %v4353_v28, %v4153_v3  ;;  %v2898_v21 = vpop.f32.mrb[17].mxu0  ;;  %v3174_v19 = vsel %vm3009_vm4, %v3128_v8, 0.0 }
 0x1ef   : > { %v3172_v10 = vsel %vm3009_vm4, %v3127_v22, 0.0  ;;  %v4394_v12 = vadd.f32 %v2898_v21, %v1824_v29 }
 0x1f0   : > { %v3173_v40 = vadd.f32 %v3172_v10, %v3171_v55  ;;  %3027 = vst.msk [vmem:[%s5818_s20 + $0x88] sm:$0xff] %vm3009_vm4, %v4393_v36  ;;  %v3072_v20 = vadd.f32 %v3071_v24, %v3070_v53  ;;  %v3130_v13 = vmul.f32 %v4393_v36, %v4393_v36  ;;  %v3075_v47 = vsel %vm3009_vm4, %v4393_v36, 0.0 }
 0x1f1   : > { %v4156_v54 = vpop.f32.mrb[18].mxu1  ;;  %3026 = vst.msk [vmem:[%s5818_s20 + $0x80] sm:$0xff] %vm3009_vm4, %v4394_v12  ;;  %v3073_v39 = vsel %vm3009_vm4, %v4394_v12, 0.0  ;;  %v3129_v41 = vmul.f32 %v4394_v12, %v4394_v12  ;;  %v4356_v17 = vpop.f32.mrb[18].mxu0 }
 0x1f2   : > { %v1834_v33 = vpop.f32.mrb[19].mxu1  ;;  %v3074_v48 = vadd.f32 %v3073_v39, %v3072_v20  ;;  %v3175_v61 = vadd.f32 %v3174_v19, %v3173_v40  ;;  %v4395_v5 = vadd.f32 %v4356_v17, %v4156_v54  ;;  %v2908_v11 = vpop.f32.mrb[19].mxu0  ;;  %v3178_v38 = vsel %vm3009_vm4, %v3130_v13, 0.0 }
 0x1f3   : > { %v3176_v63 = vsel %vm3009_vm4, %v3129_v41, 0.0  ;;  %v4396_v23 = vadd.f32 %v2908_v11, %v1834_v33 }
 0x1f4   : > { %v3177_v45 = vadd.f32 %v3176_v63, %v3175_v61  ;;  %3029 = vst.msk [vmem:[%s5818_s20 + $0x98] sm:$0xff] %vm3009_vm4, %v4395_v5  ;;  %v3076_v57 = vadd.f32 %v3075_v47, %v3074_v48  ;;  %v3132_v37 = vmul.f32 %v4395_v5, %v4395_v5  ;;  %v3079_v60 = vsel %vm3009_vm4, %v4395_v5, 0.0 }
 0x1f5   : > { %v4159_v30 = vpop.f32.mrb[20].mxu1  ;;  %3028 = vst.msk [vmem:[%s5818_s20 + $0x90] sm:$0xff] %vm3009_vm4, %v4396_v23  ;;  %v3077_v62 = vsel %vm3009_vm4, %v4396_v23, 0.0  ;;  %v3131_v4 = vmul.f32 %v4396_v23, %v4396_v23  ;;  %v4359_v35 = vpop.f32.mrb[20].mxu0 }
 0x1f6   : > { %v1844_v0 = vpop.f32.mrb[21].mxu1  ;;  %v3078_v44 = vadd.f32 %v3077_v62, %v3076_v57  ;;  %v3179_v27 = vadd.f32 %v3178_v38, %v3177_v45  ;;  %v4397_v2 = vadd.f32 %v4359_v35, %v4159_v30  ;;  %v2918_v34 = vpop.f32.mrb[21].mxu0  ;;  %v3182_v31 = vsel %vm3009_vm4, %v3132_v37, 0.0 }
 0x1f7   : > { %v3180_v16 = vsel %vm3009_vm4, %v3131_v4, 0.0  ;;  %v4398_v1 = vadd.f32 %v2918_v34, %v1844_v0 }
 0x1f8   : > { %v3181_v15 = vadd.f32 %v3180_v16, %v3179_v27  ;;  %3031 = vst.msk [vmem:[%s5818_s20 + $0xa8] sm:$0xff] %vm3009_vm4, %v4397_v2  ;;  %v3080_v18 = vadd.f32 %v3079_v60, %v3078_v44  ;;  %v3134_v32 = vmul.f32 %v4397_v2, %v4397_v2  ;;  %v3083_v46 = vsel %vm3009_vm4, %v4397_v2, 0.0 }
 0x1f9   : > { %v4162_v25 = vpop.f32.mrb[22].mxu1  ;;  %3030 = vst.msk [vmem:[%s5818_s20 + $0xa0] sm:$0xff] %vm3009_vm4, %v4398_v1  ;;  %v3081_v42 = vsel %vm3009_vm4, %v4398_v1, 0.0  ;;  %v3133_v43 = vmul.f32 %v4398_v1, %v4398_v1  ;;  %v4362_v49 = vpop.f32.mrb[22].mxu0 }
 0x1fa   : > { %v1854_v50 = vpop.f32.mrb[23].mxu1  ;;  %v3082_v52 = vadd.f32 %v3081_v42, %v3080_v18  ;;  %v3183_v26 = vadd.f32 %v3182_v31, %v3181_v15  ;;  %v4399_v51 = vadd.f32 %v4362_v49, %v4162_v25  ;;  %v2928_v56 = vpop.f32.mrb[23].mxu0  ;;  %v3186_v7 = vsel %vm3009_vm4, %v3134_v32, 0.0 }
 0x1fb   : > { %v3184_v9 = vsel %vm3009_vm4, %v3133_v43, 0.0  ;;  %v4400_v6 = vadd.f32 %v2928_v56, %v1854_v50 }
 0x1fc   : > { %v3185_v58 = vadd.f32 %v3184_v9, %v3183_v26  ;;  %3033 = vst.msk [vmem:[%s5818_s20 + $0xb8] sm:$0xff] %vm3009_vm4, %v4399_v51  ;;  %v3084_v59 = vadd.f32 %v3083_v46, %v3082_v52  ;;  %v3136_v8 = vmul.f32 %v4399_v51, %v4399_v51  ;;  %v3087_v24 = vsel %vm3009_vm4, %v4399_v51, 0.0 }
 0x1fd   : > { %v4165_v3 = vpop.f32.mrb[24].mxu1  ;;  %3032 = vst.msk [vmem:[%s5818_s20 + $0xb0] sm:$0xff] %vm3009_vm4, %v4400_v6  ;;  %v3085_v14 = vsel %vm3009_vm4, %v4400_v6, 0.0  ;;  %v3135_v22 = vmul.f32 %v4400_v6, %v4400_v6  ;;  %v4365_v28 = vpop.f32.mrb[24].mxu0 }
 0x1fe   : > { %v1864_v29 = vpop.f32.mrb[25].mxu1  ;;  %v3086_v53 = vadd.f32 %v3085_v14, %v3084_v59  ;;  %v3187_v55 = vadd.f32 %v3186_v7, %v3185_v58  ;;  %v4401_v36 = vadd.f32 %v4365_v28, %v4165_v3  ;;  %v2938_v21 = vpop.f32.mrb[25].mxu0  ;;  %v3190_v19 = vsel %vm3009_vm4, %v3136_v8, 0.0 }
 0x1ff   : > { %v3188_v10 = vsel %vm3009_vm4, %v3135_v22, 0.0  ;;  %v4402_v12 = vadd.f32 %v2938_v21, %v1864_v29 }
 0x200   : > { %v3189_v40 = vadd.f32 %v3188_v10, %v3187_v55  ;;  %3035 = vst.msk [vmem:[%s5818_s20 + $0xc8] sm:$0xff] %vm3009_vm4, %v4401_v36  ;;  %v3088_v20 = vadd.f32 %v3087_v24, %v3086_v53  ;;  %v3138_v13 = vmul.f32 %v4401_v36, %v4401_v36  ;;  %v3091_v47 = vsel %vm3009_vm4, %v4401_v36, 0.0 }
 0x201   : > { %v4168_v54 = vpop.f32.mrb[26].mxu1  ;;  %3034 = vst.msk [vmem:[%s5818_s20 + $0xc0] sm:$0xff] %vm3009_vm4, %v4402_v12  ;;  %v3089_v39 = vsel %vm3009_vm4, %v4402_v12, 0.0  ;;  %v3137_v41 = vmul.f32 %v4402_v12, %v4402_v12  ;;  %v4368_v17 = vpop.f32.mrb[26].mxu0 }
 0x202   : > { %v1874_v33 = vpop.f32.mrb[27].mxu1  ;;  %v3090_v48 = vadd.f32 %v3089_v39, %v3088_v20  ;;  %v3191_v61 = vadd.f32 %v3190_v19, %v3189_v40  ;;  %v4403_v5 = vadd.f32 %v4368_v17, %v4168_v54  ;;  %v2948_v11 = vpop.f32.mrb[27].mxu0  ;;  %v3194_v38 = vsel %vm3009_vm4, %v3138_v13, 0.0 }
 0x203   : > { %v3192_v63 = vsel %vm3009_vm4, %v3137_v41, 0.0  ;;  %v4404_v23 = vadd.f32 %v2948_v11, %v1874_v33 }
 0x204   : > { %v3193_v45 = vadd.f32 %v3192_v63, %v3191_v61  ;;  %3037 = vst.msk [vmem:[%s5818_s20 + $0xd8] sm:$0xff] %vm3009_vm4, %v4403_v5  ;;  %v3092_v57 = vadd.f32 %v3091_v47, %v3090_v48  ;;  %v3140_v37 = vmul.f32 %v4403_v5, %v4403_v5  ;;  %v3095_v60 = vsel %vm3009_vm4, %v4403_v5, 0.0 }
 0x205   : > { %v4171_v30 = vpop.f32.mrb[28].mxu1  ;;  %3036 = vst.msk [vmem:[%s5818_s20 + $0xd0] sm:$0xff] %vm3009_vm4, %v4404_v23  ;;  %v3093_v62 = vsel %vm3009_vm4, %v4404_v23, 0.0  ;;  %v3139_v4 = vmul.f32 %v4404_v23, %v4404_v23  ;;  %v4371_v35 = vpop.f32.mrb[28].mxu0 }
 0x206   : > { %v1884_v0 = vpop.f32.mrb[29].mxu1  ;;  %v3094_v44 = vadd.f32 %v3093_v62, %v3092_v57  ;;  %v3195_v27 = vadd.f32 %v3194_v38, %v3193_v45  ;;  %v4405_v2 = vadd.f32 %v4371_v35, %v4171_v30  ;;  %v2958_v34 = vpop.f32.mrb[29].mxu0  ;;  %v3198_v31 = vsel %vm3009_vm4, %v3140_v37, 0.0 }
 0x207   : > { %v3196_v16 = vsel %vm3009_vm4, %v3139_v4, 0.0  ;;  %v4406_v1 = vadd.f32 %v2958_v34, %v1884_v0 }
 0x208   : > { %v3197_v15 = vadd.f32 %v3196_v16, %v3195_v27  ;;  %3039 = vst.msk [vmem:[%s5818_s20 + $0xe8] sm:$0xff] %vm3009_vm4, %v4405_v2  ;;  %v3096_v18 = vadd.f32 %v3095_v60, %v3094_v44  ;;  %v3142_v32 = vmul.f32 %v4405_v2, %v4405_v2  ;;  %v3099_v46 = vsel %vm3009_vm4, %v4405_v2, 0.0 }
 0x209   : > { %v4174_v25 = vpop.f32.mrb[30].mxu1  ;;  %3038 = vst.msk [vmem:[%s5818_s20 + $0xe0] sm:$0xff] %vm3009_vm4, %v4406_v1  ;;  %v3097_v42 = vsel %vm3009_vm4, %v4406_v1, 0.0  ;;  %v3141_v43 = vmul.f32 %v4406_v1, %v4406_v1  ;;  %v4374_v49 = vpop.f32.mrb[30].mxu0 }
 0x20a   : > { %v1894_v50 = vpop.f32.mrb[31].mxu1  ;;  %v3098_v52 = vadd.f32 %v3097_v42, %v3096_v18  ;;  %v3199_v26 = vadd.f32 %v3198_v31, %v3197_v15  ;;  %v4407_v51 = vadd.f32 %v4374_v49, %v4174_v25  ;;  %v2968_v56 = vpop.f32.mrb[31].mxu0  ;;  %v3202_v7 = vsel %vm3009_vm4, %v3142_v32, 0.0 }
 0x20b   : > { %v3200_v9 = vsel %vm3009_vm4, %v3141_v43, 0.0  ;;  %v4408_v6 = vadd.f32 %v2968_v56, %v1894_v50 }
 0x20c   : > { %v3201_v58 = vadd.f32 %v3200_v9, %v3199_v26  ;;  %3041 = vst.msk [vmem:[%s5818_s20 + $0xf8] sm:$0xff] %vm3009_vm4, %v4407_v51  ;;  %v3144_v59 = vmul.f32 %v4407_v51, %v4407_v51  ;;  %v3100_v3 = vadd.f32 %v3099_v46, %v3098_v52  ;;  %v3103_v53 = vsel %vm3009_vm4, %v4407_v51, 0.0 }
 0x20d   : > { %3040 = vst.msk [vmem:[%s5818_s20 + $0xf0] sm:$0xff] %vm3009_vm4, %v4408_v6  ;;  %v3101_v8 = vsel %vm3009_vm4, %v4408_v6, 0.0  ;;  %v3143_v14 = vmul.f32 %v4408_v6, %v4408_v6 }
 0x20e   : > { %v3206_v22 = vsel %vm3009_vm4, %v3144_v59, 0.0  ;;  %v3102_v28 = vadd.f32 %v3101_v8, %v3100_v3  ;;  %v3203_v29 = vadd.f32 %v3202_v7, %v3201_v58 }
 0x20f   : > { %v3204_v55 = vsel %vm3009_vm4, %v3143_v14, 0.0 }
 0x210   : > { %v3104_v36 = vadd.f32 %v3103_v53, %v3102_v28  ;;  %v3205_v21 = vadd.f32 %v3204_v55, %v3203_v29 }
 0x212   : > { %v3105_v24 = vrot.slane %v3104_v36, 4  ;;  %v3207_v10 = vadd.f32 %v3206_v22, %v3205_v21 }
 0x214   : > { %v3106_v12 = vadd.f32 %v3105_v24, %v3104_v36  ;;  %v3208_v40 = vrot.slane %v3207_v10, 4 }
 0x216   : > { %v3107_v20 = vrot.slane %v3106_v12, 2  ;;  %v3209_v54 = vadd.f32 %v3208_v40, %v3207_v10 }
 0x218   : > { %v3108_v19 = vadd.f32 %v3107_v20, %v3106_v12  ;;  %v3210_v13 = vrot.slane %v3209_v54, 2 }
 0x21a   : > { %v3109_v39 = vrot.slane %v3108_v19, 1  ;;  %v3211_v41 = vadd.f32 %v3210_v13, %v3209_v54 }
 0x21c   : > { %v3110_v17 = vadd.f32 %v3109_v39, %v3108_v19  ;;  %v3212_v33 = vrot.slane %v3211_v41, 1 }
 0x21e   : > { %3112 = vst.msk [vmem:[%s212_s22] sm:$0x1] %vm3111_vm5, %v3110_v17  ;;  %v3213_v48 = vadd.f32 %v3212_v33, %v3211_v41 }
 0x220   : > { %3214 = vst.msk [vmem:[%s215_s26] sm:$0x1] %vm3111_vm5, %v3213_v48 }
 0x221 PF: > { %s15_s15 = sadd.s32 1, %s4648_s15  }
 0x222   : > { %p12_p5 = scmp.ge.s32.totalorder %s15_s15, 4  }
 0x224   :  { %14 = sbr.rel (!%p12_p5) target bundleno = 1 (0x1), region = 82 }

</bundles_post_ra>
